<compile_context>
chip_gen: v6e
topology: v6e:2x2x1
jax: 0.10.0
libtpu: 0.0.40
codegen_flags: <defaults>
</compile_context>

<pallas_src>
import functools
import math

import jax
import jax.numpy as jnp
from jax.experimental import pallas as pl
from jax.experimental.pallas import tpu as pltpu


def _patch_expand_kernel(x_ref, w_ref, g_ref, b_ref, o_ref, *, dim_scale, c, eps):
    # x_ref: (tile_n, C)                   flattened spatial rows (tile_rows * W of them)
    # w_ref: (C, dim_scale*dim_scale*c)    full expand weight (already transposed)
    # g_ref/b_ref: (1, c)                  LayerNorm affine params (f32)
    # o_ref: (tile_rows, dim_scale, W, dim_scale*c)  direct view into the rearranged output
    tile_rows, _, W, half = o_ref.shape
    y = jnp.dot(x_ref[...], w_ref[...], preferred_element_type=jnp.float32)  # MXU, f32 acc
    g = g_ref[...].astype(jnp.float32)
    b = b_ref[...].astype(jnp.float32)
    inv_c = 1.0 / c

    for p1 in range(dim_scale):            # static: one lane-dense store per p1 half
        chunks = []
        for p2 in range(dim_scale):        # static: LayerNorm over each c-chunk
            off = (p1 * dim_scale + p2) * c
            yc = y[:, off:off + c]
            mean = jnp.sum(yc, axis=-1, keepdims=True) * inv_c
            ex2 = jnp.sum(yc * yc, axis=-1, keepdims=True) * inv_c
            var = ex2 - mean * mean
            inv = jax.lax.rsqrt(var + eps) * g           # fold gamma into the scale
            chunks.append(yc * inv + (b - mean * inv))   # (yc - mean) * inv + b
        out_p1 = chunks[0] if dim_scale == 1 else jnp.concatenate(chunks, axis=-1)
        o_ref[:, p1, :, :] = out_p1.reshape(tile_rows, W, half).astype(o_ref.dtype)


def _pick_tile_rows(rows, W, in_itemsize, step_bytes, vmem_budget, target_flat=2048):
    """Spatial-row tile: ~target_flat flattened rows, VMEM-bounded, sublane-aligned."""
    sub = {4: 8, 2: 16, 1: 32}.get(in_itemsize, 8)   # sublane multiple for the x dtype
    align = max(1, sub // math.gcd(W, sub))          # tile_rows % align == 0 keeps (tr*W) % sub == 0
    if rows * W <= target_flat and step_bytes(rows) <= vmem_budget:
        return rows                                  # whole problem in a single full-extent step
    tr = min(rows, max(1, target_flat // W))
    tr = max(align, (tr // align) * align)
    while tr > align and step_bytes(tr) > vmem_budget:
        tr -= align
    # TODO(synk): if even `align` rows exceed the VMEM budget (huge W*C), a K/N split of
    # the matmul would be needed; not required for vmamba shapes.
    return min(tr, rows)


def patch_expand2d(x, w_expand_t, gamma, beta, *, dim_scale=2, eps=1e-5):
    """x: (B, H, W, C); w_expand_t: (C, dim_scale*C); gamma/beta: (C // dim_scale,)."""
    B, H, W, C = x.shape
    assert C % dim_scale == 0
    c = C // dim_scale
    half = dim_scale * c                    # features per p1 half of an output spatial row
    out_feat = dim_scale * dim_scale * c    # == dim_scale * C
    assert w_expand_t.shape == (C, out_feat)

    rows = B * H
    N = rows * W
    in_isz = x.dtype.itemsize
    w_isz = w_expand_t.dtype.itemsize
    out_dtype = x.dtype
    out_isz = in_isz

    try:
        vmem_cap = int(pltpu.get_tpu_info().vmem_capacity_bytes)
    except Exception:                        # older runtimes / query unavailable
        vmem_cap = 64 * 1024 * 1024          # conservative (v7x) fallback

    def step_bytes(tr):
        tn = tr * W
        return (2 * tn * C * in_isz                 # double-buffered x tile
                + 2 * C * out_feat * w_isz          # weight (bounded as double-buffered)
                + 2 * tn * out_feat * out_isz       # double-buffered output tile
                + tn * out_feat * 4)                # f32 matmul result held in VMEM/vregs

    tile_rows = _pick_tile_rows(rows, W, in_isz, step_bytes, int(0.6 * vmem_cap))
    tile_n = tile_rows * W
    grid = (pl.cdiv(rows, tile_rows),)              # remainder handled by masked last block

    xf = x.reshape(N, C)
    g2 = gamma.reshape(1, c).astype(jnp.float32)
    b2 = beta.reshape(1, c).astype(jnp.float32)

    kernel = functools.partial(_patch_expand_kernel, dim_scale=dim_scale, c=c, eps=eps)

    vmem_limit = int(min(vmem_cap, max(32 * 1024 * 1024, 2 * step_bytes(tile_rows))))

    cost = pl.CostEstimate(
        flops=int(2 * N * C * out_feat),
        transcendentals=int(N * dim_scale * dim_scale),
        bytes_accessed=int(N * C * in_isz               # x is read exactly once now
                           + C * out_feat * w_isz
                           + N * out_feat * out_isz),
    )

    out = pl.pallas_call(
        kernel,
        out_shape=jax.ShapeDtypeStruct((rows, dim_scale, W, half), out_dtype),
        grid_spec=pltpu.PrefetchScalarGridSpec(
            num_scalar_prefetch=0,
            grid=grid,
            in_specs=[
                pl.BlockSpec((tile_n, C), lambda i: (i, 0)),
                pl.BlockSpec((C, out_feat), lambda i: (0, 0)),   # constant block -> resident
                pl.BlockSpec((1, c), lambda i: (0, 0)),
                pl.BlockSpec((1, c), lambda i: (0, 0)),
            ],
            out_specs=pl.BlockSpec((tile_rows, dim_scale, W, half),
                                   lambda i: (i, 0, 0, 0)),
        ),
        compiler_params=pltpu.CompilerParams(
            dimension_semantics=("parallel",),     # row tiles shard across TCs on v7x
            vmem_limit_bytes=vmem_limit,
        ),
        cost_estimate=cost,
    )(xf, w_expand_t, g2, b2)

    # (B*H, p1, W, p2*c) is a contiguous view of (B, H*p1, W*p2, c): metadata-only reshape.
    return out.reshape(B, H * dim_scale, W * dim_scale, c)


def _reference(x, w_expand_t, gamma, beta, dim_scale=2, eps=1e-5):
    B, H, W, C = x.shape
    c = C // dim_scale
    y = jnp.dot(x, w_expand_t)
    y = y.reshape(B, H, W, dim_scale, dim_scale, c)
    y = y.transpose(0, 1, 3, 2, 4, 5).reshape(B, H * dim_scale, W * dim_scale, c)
    mean = y.mean(-1, keepdims=True)
    var = ((y - mean) ** 2).mean(-1, keepdims=True)
    return (y - mean) * jax.lax.rsqrt(var + eps) * gamma + beta


if __name__ == "__main__":
    # Module config: dim=64 => forward input channels C == 2*dim == 128, dim_scale=2,
    # output channels c == 64 (so the matmul is N=256 and each p1 half store is 128-wide).
    dim = 64
    dim_scale = 2
    C = dim * 2
    c = C // dim_scale
    B, H, W = 2, 8, 8

    key = jax.random.PRNGKey(0)
    kx, kw, kg, kb = jax.random.split(key, 4)

    x = jax.random.normal(kx, (B, H, W, C), dtype=jnp.float32)
    # nn.Linear(C, dim_scale*C, bias=False): weight is (out, in); we pass its transpose (in, out).
    w_torch = jax.random.normal(kw, (dim_scale * C, C), dtype=jnp.float32) * (1.0 / jnp.sqrt(C))
    w_expand_t = w_torch.T
    # nn.LayerNorm(c) affine params (nontrivial, deterministic).
    gamma = 1.0 + 0.1 * jax.random.normal(kg, (c,), dtype=jnp.float32)
    beta = 0.1 * jax.random.normal(kb, (c,), dtype=jnp.float32)

    ref = _reference(x, w_expand_t, gamma, beta, dim_scale=dim_scale)

    # f32 operand path (strict check).
    out = patch_expand2d(x, w_expand_t, gamma, beta, dim_scale=dim_scale)
    out = jax.block_until_ready(out)
    assert out.shape == (B, H * dim_scale, W * dim_scale, c), out.shape
    err = float(jnp.max(jnp.abs(out - ref)))
    assert jnp.allclose(out, ref, atol=5e-4, rtol=5e-4), err

    # bf16 operand/output path (review's v6e/v7x recommendation): halves x/w/out HBM bytes;
    # MXU still accumulates in f32 and LayerNorm math stays f32. Loose tolerance.
    out_bf16 = patch_expand2d(x.astype(jnp.bfloat16), w_expand_t.astype(jnp.bfloat16),
                              gamma, beta, dim_scale=dim_scale)
    out_bf16 = jax.block_until_ready(out_bf16).astype(jnp.float32)
    assert out_bf16.shape == (B, H * dim_scale, W * dim_scale, c), out_bf16.shape
    bf_err = float(jnp.max(jnp.abs(out_bf16 - ref)))
    assert bool(jnp.all(jnp.isfinite(out_bf16))) and bf_err < 0.25, bf_err

    print("KERNEL_OK")
</pallas_src>

<mosaic_0001>
module attributes {stable_mosaic.version = 11 : i64} {
  func.func @_patch_expand_kernel(%arg0: i32, %arg1: memref<128x128xf32, #tpu.memory_space<vmem>>, %arg2: memref<128x256xf32, #tpu.memory_space<vmem>>, %arg3: memref<1x64xf32, #tpu.memory_space<vmem>>, %arg4: memref<1x64xf32, #tpu.memory_space<vmem>>, %arg5: memref<16x2x8x128xf32, #tpu.memory_space<vmem>>) attributes {dimension_semantics = [#tpu.dimension_semantics<parallel>], iteration_bounds = array<i64: 1>, scalar_prefetch = 0 : i64, scratch_operands = 0 : i64, tpu.core_type = #tpu.core_type<tc>, window_params = [{transform_indices = @transform_0, window_bounds = array<i64: 128, 128>}, {pipeline_mode = #tpu.pipeline_mode<synchronous>, transform_indices = @transform_1, window_bounds = array<i64: 128, 256>}, {pipeline_mode = #tpu.pipeline_mode<synchronous>, transform_indices = @transform_2, window_bounds = array<i64: 1, 64>}, {pipeline_mode = #tpu.pipeline_mode<synchronous>, transform_indices = @transform_3, window_bounds = array<i64: 1, 64>}, {transform_indices = @transform_4, window_bounds = array<i64: 16, 2, 8, 128>}]} {
    %c0 = arith.constant 0 : index
    %c0_0 = arith.constant 0 : index
    %0 = vector.load %arg1[%c0, %c0_0] : memref<128x128xf32, #tpu.memory_space<vmem>>, vector<128x128xf32>
    %c0_1 = arith.constant 0 : index
    %c0_2 = arith.constant 0 : index
    %1 = vector.load %arg2[%c0_1, %c0_2] : memref<128x256xf32, #tpu.memory_space<vmem>>, vector<128x256xf32>
    %cst = arith.constant dense<0.000000e+00> : vector<128x256xf32>
    %2 = tpu.matmul %0, %1, %cst {dimension_numbers = #tpu.dot_dimension_numbers<[1], [0], [0], [1], [0, 0, 1, 1], [], []>} : vector<128x128xf32>, vector<128x256xf32>, vector<128x256xf32> -> vector<128x256xf32>
    %c0_3 = arith.constant 0 : index
    %c0_4 = arith.constant 0 : index
    %3 = vector.load %arg3[%c0_3, %c0_4] : memref<1x64xf32, #tpu.memory_space<vmem>>, vector<1x64xf32>
    %c0_5 = arith.constant 0 : index
    %c0_6 = arith.constant 0 : index
    %4 = vector.load %arg4[%c0_5, %c0_6] : memref<1x64xf32, #tpu.memory_space<vmem>>, vector<1x64xf32>
    %5 = vector.extract_strided_slice %2 {offsets = [0, 0], sizes = [128, 64], strides = [1, 1]} : vector<128x256xf32> to vector<128x64xf32>
    %cst_7 = arith.constant dense<0.000000e+00> : vector<128xf32>
    %6 = vector.multi_reduction <add>, %5, %cst_7 [1] : vector<128x64xf32> to vector<128xf32>
    %7 = vector.shape_cast %6 : vector<128xf32> to vector<128x1xf32>
    %cst_8 = arith.constant 1.562500e-02 : f32
    %8 = vector.broadcast %cst_8 : f32 to vector<128x1xf32>
    %9 = arith.mulf %7, %8 : vector<128x1xf32>
    %10 = arith.mulf %5, %5 : vector<128x64xf32>
    %cst_9 = arith.constant dense<0.000000e+00> : vector<128xf32>
    %11 = vector.multi_reduction <add>, %10, %cst_9 [1] : vector<128x64xf32> to vector<128xf32>
    %12 = vector.shape_cast %11 : vector<128xf32> to vector<128x1xf32>
    %cst_10 = arith.constant 1.562500e-02 : f32
    %13 = vector.broadcast %cst_10 : f32 to vector<128x1xf32>
    %14 = arith.mulf %12, %13 : vector<128x1xf32>
    %15 = arith.mulf %9, %9 : vector<128x1xf32>
    %16 = arith.subf %14, %15 : vector<128x1xf32>
    %cst_11 = arith.constant 9.99999974E-6 : f32
    %17 = vector.broadcast %cst_11 : f32 to vector<128x1xf32>
    %18 = arith.addf %16, %17 : vector<128x1xf32>
    %19 = math.rsqrt %18 : vector<128x1xf32>
    %20 = vector.broadcast %19 : vector<128x1xf32> to vector<128x64xf32>
    %21 = vector.broadcast %3 : vector<1x64xf32> to vector<128x64xf32>
    %22 = arith.mulf %20, %21 : vector<128x64xf32>
    %23 = arith.mulf %5, %22 : vector<128x64xf32>
    %24 = vector.broadcast %9 : vector<128x1xf32> to vector<128x64xf32>
    %25 = arith.mulf %24, %22 : vector<128x64xf32>
    %26 = vector.broadcast %4 : vector<1x64xf32> to vector<128x64xf32>
    %27 = arith.subf %26, %25 : vector<128x64xf32>
    %28 = arith.addf %23, %27 : vector<128x64xf32>
    %29 = vector.extract_strided_slice %2 {offsets = [0, 64], sizes = [128, 64], strides = [1, 1]} : vector<128x256xf32> to vector<128x64xf32>
    %cst_12 = arith.constant dense<0.000000e+00> : vector<128xf32>
    %30 = vector.multi_reduction <add>, %29, %cst_12 [1] : vector<128x64xf32> to vector<128xf32>
    %31 = vector.shape_cast %30 : vector<128xf32> to vector<128x1xf32>
    %cst_13 = arith.constant 1.562500e-02 : f32
    %32 = vector.broadcast %cst_13 : f32 to vector<128x1xf32>
    %33 = arith.mulf %31, %32 : vector<128x1xf32>
    %34 = arith.mulf %29, %29 : vector<128x64xf32>
    %cst_14 = arith.constant dense<0.000000e+00> : vector<128xf32>
    %35 = vector.multi_reduction <add>, %34, %cst_14 [1] : vector<128x64xf32> to vector<128xf32>
    %36 = vector.shape_cast %35 : vector<128xf32> to vector<128x1xf32>
    %cst_15 = arith.constant 1.562500e-02 : f32
    %37 = vector.broadcast %cst_15 : f32 to vector<128x1xf32>
    %38 = arith.mulf %36, %37 : vector<128x1xf32>
    %39 = arith.mulf %33, %33 : vector<128x1xf32>
    %40 = arith.subf %38, %39 : vector<128x1xf32>
    %cst_16 = arith.constant 9.99999974E-6 : f32
    %41 = vector.broadcast %cst_16 : f32 to vector<128x1xf32>
    %42 = arith.addf %40, %41 : vector<128x1xf32>
    %43 = math.rsqrt %42 : vector<128x1xf32>
    %44 = vector.broadcast %43 : vector<128x1xf32> to vector<128x64xf32>
    %45 = vector.broadcast %3 : vector<1x64xf32> to vector<128x64xf32>
    %46 = arith.mulf %44, %45 : vector<128x64xf32>
    %47 = arith.mulf %29, %46 : vector<128x64xf32>
    %48 = vector.broadcast %33 : vector<128x1xf32> to vector<128x64xf32>
    %49 = arith.mulf %48, %46 : vector<128x64xf32>
    %50 = vector.broadcast %4 : vector<1x64xf32> to vector<128x64xf32>
    %51 = arith.subf %50, %49 : vector<128x64xf32>
    %52 = arith.addf %47, %51 : vector<128x64xf32>
    %53 = tpu.concatenate %28, %52 in 1 : vector<128x64xf32>, vector<128x64xf32> -> vector<128x128xf32>
    %54 = vector.shape_cast %53 : vector<128x128xf32> to vector<16x8x128xf32>
    %c0_17 = arith.constant 0 : index
    %c0_18 = arith.constant 0 : index
    %c0_19 = arith.constant 0 : index
    %c0_20 = arith.constant 0 : index
    %55 = vector.load %arg5[%c0_17, %c0_18, %c0_19, %c0_20] : memref<16x2x8x128xf32, #tpu.memory_space<vmem>>, vector<16x1x8x128xf32>
    %56 = vector.shape_cast %55 : vector<16x1x8x128xf32> to vector<16x8x128xf32>
    %57 = vector.shape_cast %54 : vector<16x8x128xf32> to vector<16x1x8x128xf32>
    tpu.vector_store %arg5[%c0_17, %c0_18, %c0_19, %c0_20], %57 {strides = array<i32>} : memref<16x2x8x128xf32, #tpu.memory_space<vmem>>, vector<16x1x8x128xf32>,
    %58 = vector.extract_strided_slice %2 {offsets = [0, 128], sizes = [128, 64], strides = [1, 1]} : vector<128x256xf32> to vector<128x64xf32>
    %cst_21 = arith.constant dense<0.000000e+00> : vector<128xf32>
    %59 = vector.multi_reduction <add>, %58, %cst_21 [1] : vector<128x64xf32> to vector<128xf32>
    %60 = vector.shape_cast %59 : vector<128xf32> to vector<128x1xf32>
    %cst_22 = arith.constant 1.562500e-02 : f32
    %61 = vector.broadcast %cst_22 : f32 to vector<128x1xf32>
    %62 = arith.mulf %60, %61 : vector<128x1xf32>
    %63 = arith.mulf %58, %58 : vector<128x64xf32>
    %cst_23 = arith.constant dense<0.000000e+00> : vector<128xf32>
    %64 = vector.multi_reduction <add>, %63, %cst_23 [1] : vector<128x64xf32> to vector<128xf32>
    %65 = vector.shape_cast %64 : vector<128xf32> to vector<128x1xf32>
    %cst_24 = arith.constant 1.562500e-02 : f32
    %66 = vector.broadcast %cst_24 : f32 to vector<128x1xf32>
    %67 = arith.mulf %65, %66 : vector<128x1xf32>
    %68 = arith.mulf %62, %62 : vector<128x1xf32>
    %69 = arith.subf %67, %68 : vector<128x1xf32>
    %cst_25 = arith.constant 9.99999974E-6 : f32
    %70 = vector.broadcast %cst_25 : f32 to vector<128x1xf32>
    %71 = arith.addf %69, %70 : vector<128x1xf32>
    %72 = math.rsqrt %71 : vector<128x1xf32>
    %73 = vector.broadcast %72 : vector<128x1xf32> to vector<128x64xf32>
    %74 = vector.broadcast %3 : vector<1x64xf32> to vector<128x64xf32>
    %75 = arith.mulf %73, %74 : vector<128x64xf32>
    %76 = arith.mulf %58, %75 : vector<128x64xf32>
    %77 = vector.broadcast %62 : vector<128x1xf32> to vector<128x64xf32>
    %78 = arith.mulf %77, %75 : vector<128x64xf32>
    %79 = vector.broadcast %4 : vector<1x64xf32> to vector<128x64xf32>
    %80 = arith.subf %79, %78 : vector<128x64xf32>
    %81 = arith.addf %76, %80 : vector<128x64xf32>
    %82 = vector.extract_strided_slice %2 {offsets = [0, 192], sizes = [128, 64], strides = [1, 1]} : vector<128x256xf32> to vector<128x64xf32>
    %cst_26 = arith.constant dense<0.000000e+00> : vector<128xf32>
    %83 = vector.multi_reduction <add>, %82, %cst_26 [1] : vector<128x64xf32> to vector<128xf32>
    %84 = vector.shape_cast %83 : vector<128xf32> to vector<128x1xf32>
    %cst_27 = arith.constant 1.562500e-02 : f32
    %85 = vector.broadcast %cst_27 : f32 to vector<128x1xf32>
    %86 = arith.mulf %84, %85 : vector<128x1xf32>
    %87 = arith.mulf %82, %82 : vector<128x64xf32>
    %cst_28 = arith.constant dense<0.000000e+00> : vector<128xf32>
    %88 = vector.multi_reduction <add>, %87, %cst_28 [1] : vector<128x64xf32> to vector<128xf32>
    %89 = vector.shape_cast %88 : vector<128xf32> to vector<128x1xf32>
    %cst_29 = arith.constant 1.562500e-02 : f32
    %90 = vector.broadcast %cst_29 : f32 to vector<128x1xf32>
    %91 = arith.mulf %89, %90 : vector<128x1xf32>
    %92 = arith.mulf %86, %86 : vector<128x1xf32>
    %93 = arith.subf %91, %92 : vector<128x1xf32>
    %cst_30 = arith.constant 9.99999974E-6 : f32
    %94 = vector.broadcast %cst_30 : f32 to vector<128x1xf32>
    %95 = arith.addf %93, %94 : vector<128x1xf32>
    %96 = math.rsqrt %95 : vector<128x1xf32>
    %97 = vector.broadcast %96 : vector<128x1xf32> to vector<128x64xf32>
    %98 = vector.broadcast %3 : vector<1x64xf32> to vector<128x64xf32>
    %99 = arith.mulf %97, %98 : vector<128x64xf32>
    %100 = arith.mulf %82, %99 : vector<128x64xf32>
    %101 = vector.broadcast %86 : vector<128x1xf32> to vector<128x64xf32>
    %102 = arith.mulf %101, %99 : vector<128x64xf32>
    %103 = vector.broadcast %4 : vector<1x64xf32> to vector<128x64xf32>
    %104 = arith.subf %103, %102 : vector<128x64xf32>
    %105 = arith.addf %100, %104 : vector<128x64xf32>
    %106 = tpu.concatenate %81, %105 in 1 : vector<128x64xf32>, vector<128x64xf32> -> vector<128x128xf32>
    %107 = vector.shape_cast %106 : vector<128x128xf32> to vector<16x8x128xf32>
    %c0_31 = arith.constant 0 : index
    %c1 = arith.constant 1 : index
    %c0_32 = arith.constant 0 : index
    %c0_33 = arith.constant 0 : index
    %108 = vector.load %arg5[%c0_31, %c1, %c0_32, %c0_33] : memref<16x2x8x128xf32, #tpu.memory_space<vmem>>, vector<16x1x8x128xf32>
    %109 = vector.shape_cast %108 : vector<16x1x8x128xf32> to vector<16x8x128xf32>
    %110 = vector.shape_cast %107 : vector<16x8x128xf32> to vector<16x1x8x128xf32>
    tpu.vector_store %arg5[%c0_31, %c1, %c0_32, %c0_33], %110 {strides = array<i32>} : memref<16x2x8x128xf32, #tpu.memory_space<vmem>>, vector<16x1x8x128xf32>,
    return
  }
  func.func @transform_0(%arg0: i32) -> (i32, i32) {
    %c0_i32 = arith.constant 0 : i32
    %c0_i32_0 = arith.constant 0 : i32
    return %arg0, %c0_i32 : i32, i32
  }
  func.func @transform_1(%arg0: i32) -> (i32, i32) {
    %c0_i32 = arith.constant 0 : i32
    %c0_i32_0 = arith.constant 0 : i32
    %c0_i32_1 = arith.constant 0 : i32
    return %c0_i32, %c0_i32_0 : i32, i32
  }
  func.func @transform_2(%arg0: i32) -> (i32, i32) {
    %c0_i32 = arith.constant 0 : i32
    %c0_i32_0 = arith.constant 0 : i32
    %c0_i32_1 = arith.constant 0 : i32
    return %c0_i32, %c0_i32_0 : i32, i32
  }
  func.func @transform_3(%arg0: i32) -> (i32, i32) {
    %c0_i32 = arith.constant 0 : i32
    %c0_i32_0 = arith.constant 0 : i32
    %c0_i32_1 = arith.constant 0 : i32
    return %c0_i32, %c0_i32_0 : i32, i32
  }
  func.func @transform_4(%arg0: i32) -> (i32, i32, i32, i32) {
    %c0_i32 = arith.constant 0 : i32
    %c0_i32_0 = arith.constant 0 : i32
    %c0_i32_1 = arith.constant 0 : i32
    %c0_i32_2 = arith.constant 0 : i32
    return %arg0, %c0_i32, %c0_i32_0, %c0_i32_1 : i32, i32, i32, i32
  }
}

</mosaic_0001>

<bundles_post_ra>
// kernel: tpu_custom_call.1
= control target key start
LH: loop header
LB: loop body
LE: loop exit
PB: predicated region body
PF: predicated region fallthrough
CT: control target
= control target key end

     0   :  { %9 = vsyncpa [#allocation3], 0  ;;  %s3738_s0 = inlined_call_operand.hbm [shape: f32[128,128], index: 0, kind: input, shape index: {}]   ;;  %s3739_s1 = inlined_call_operand.hbm [shape: f32[128,256], index: 1, kind: input, shape index: {}]   ;;  %s3740_s2 = inlined_call_operand.vmem [shape: f32[1,64], index: 2, kind: input, shape index: {}]   ;;  %s3741_s3 = inlined_call_operand.vmem [shape: f32[1,64], index: 3, kind: input, shape index: {}]   ;;  %s3742_s4 = inlined_call_operand.hbm [shape: f32[16,2,8,128], index: 4, kind: output, shape index: {}]  }
   0x1   :  { %10 = vsyncpa [#allocation6], 0 }
   0x2   :  { %11 = vsyncpa [#allocation4], 0  ;;  %s2226_s15 = smov [#allocation2]  }
   0x3   :  { %s17_s16 = sshll.u32 %s2226_s15, 4  ;;  %s18_s16 = int_to_ptr.vmem [resolvable:$true] %s17_s16 }
   0x4   :  { %s2168_s17 = scalar_lea.vmem %s18_s16, 2048  ;;  %p2173_p1 = scmp.lt.s32.totalorder %s18_s16, %s18_s16 }
   0x5   :  { %p2169_p0 = scmp.ne.s32.totalorder %s18_s16, %s2168_s17  ;;  %p2174_p2 = scmp.lt.s32.totalorder %s2168_s17, %s2168_s17 }
   0x7   :  { %p2175_p3 = por %p2174_p2, %p2173_p1 }
   0x9   :  { %p2176_p4 = pnand %p2175_p3, %p2169_p0 }
   0xb   :  { %2179 = shalt.err (!%p2176_p4)
}
   0xc   :  { %s2227_s18 = smov 128   ;;  %s2228_s19 = smov 8  }
   0xd   :  { %23 = dma.hbm_to_vmem [thread:$0]  %s3738_s0, 2048, %s18_s16, [#allocation3], %s2227_s18, %s2227_s18, %s2228_s19  }
   0xe   :  { %s2229_s22 = smov [#allocation5]  }
   0xf   :  { %s29_s23 = sshll.u32 %s2229_s22, 4  ;;  %s30_s23 = int_to_ptr.vmem [resolvable:$true] %s29_s23 }
  0x10   :  { %s2188_s24 = scalar_lea.vmem %s30_s23, 4096  ;;  %p2193_p6 = scmp.lt.s32.totalorder %s30_s23, %s30_s23 }
  0x11   :  { %p2189_p5 = scmp.ne.s32.totalorder %s30_s23, %s2188_s24  ;;  %p2194_p7 = scmp.lt.s32.totalorder %s2188_s24, %s2188_s24 }
  0x13   :  { %p2195_p8 = por %p2194_p7, %p2193_p6 }
  0x15   :  { %p2196_p9 = pnand %p2195_p8, %p2189_p5 }
  0x17   :  { %2199 = shalt.err (!%p2196_p9)
}
  0x18   :  { %s2230_s25 = smov 256   ;;  %s2231_s26 = smov 16  }
  0x19   :  { %35 = dma.hbm_to_vmem [thread:$0]  %s3739_s1, 4096, %s30_s23, [#allocation6], %s2230_s25, %s2230_s25, %s2231_s26  }
  0x1a   :  { %2220 = dma.done.wait [#allocation3], 2048  }
  0x1b   :  { %2221 = vsyncadd [#allocation3], 4294965248 }
  0x1c   :  { %2222 = dma.done.wait [#allocation6], 4096  }
  0x1d   :  { %2223 = vsyncadd [#allocation6], 4294963200  ;;  %v2232_v0 = vmov 0.0   ;;  %v93_v1 = vld [vmem:[#allocation5 + $0xf8] sm:$0xff]  ;;  %v92_v2 = vld [vmem:[#allocation5 + $0xf0] sm:$0xff]  ;;  %s2233_s0 = smov 64  }
  0x1e   :  { %158 = vmatprep.mubr.f32.mxu0 %v2232_v0  ;;  %206 = vmatprep.mubr.f32.mxu1 %v2232_v0  ;;  %v91_v3 = vld [vmem:[#allocation5 + $0xe8] sm:$0xff]  ;;  %v90_v4 = vld [vmem:[#allocation5 + $0xe0] sm:$0xff]  ;;  %v89_v5 = vld [vmem:[#allocation5 + $0xd8] sm:$0xff]  ;;  %vm257_vm0 = vcmask 523264  }
  0x1f   :  { %94 = vmatprep.subr.mxu0 %v93_v1  ;;  %1987 = vmatprep.subr.mxu1 %v93_v1  ;;  %v88_v6 = vld [vmem:[#allocation5 + $0xd0] sm:$0xff]  ;;  %v87_v7 = vld [vmem:[#allocation5 + $0xc8] sm:$0xff]  ;;  %v86_v8 = vld [vmem:[#allocation5 + $0xc0] sm:$0xff] }
  0x20   :  { %95 = vmatpush1.msra.mxu0 %v92_v2  ;;  %2003 = vmatpush1.msra.mxu1 %v92_v2  ;;  %v85_v9 = vld [vmem:[#allocation5 + $0xb8] sm:$0xff]  ;;  %v84_v10 = vld [vmem:[#allocation5 + $0xb0] sm:$0xff]  ;;  %v83_v11 = vld [vmem:[#allocation5 + $0xa8] sm:$0xff] }
  0x21   :  { %96 = vmatprep.subr.mxu0 %v91_v3  ;;  %1988 = vmatprep.subr.mxu1 %v91_v3  ;;  %v82_v12 = vld [vmem:[#allocation5 + $0xa0] sm:$0xff]  ;;  %v81_v13 = vld [vmem:[#allocation5 + $0x98] sm:$0xff]  ;;  %v80_v14 = vld [vmem:[#allocation5 + $0x90] sm:$0xff] }
  0x22   :  { %97 = vmatpush1.msra.mxu0 %v90_v4  ;;  %2004 = vmatpush1.msra.mxu1 %v90_v4  ;;  %v79_v15 = vld [vmem:[#allocation5 + $0x88] sm:$0xff]  ;;  %v78_v16 = vld [vmem:[#allocation5 + $0x80] sm:$0xff]  ;;  %v77_v17 = vld [vmem:[#allocation5 + $0x78] sm:$0xff] }
  0x23   :  { %98 = vmatprep.subr.mxu0 %v89_v5  ;;  %1989 = vmatprep.subr.mxu1 %v89_v5  ;;  %v76_v18 = vld [vmem:[#allocation5 + $0x70] sm:$0xff]  ;;  %v75_v19 = vld [vmem:[#allocation5 + $0x68] sm:$0xff]  ;;  %v74_v20 = vld [vmem:[#allocation5 + $0x60] sm:$0xff] }
  0x24   :  { %99 = vmatpush1.msra.mxu0 %v88_v6  ;;  %2005 = vmatpush1.msra.mxu1 %v88_v6  ;;  %v73_v21 = vld [vmem:[#allocation5 + $0x58] sm:$0xff]  ;;  %v72_v22 = vld [vmem:[#allocation5 + $0x50] sm:$0xff]  ;;  %v71_v23 = vld [vmem:[#allocation5 + $0x48] sm:$0xff] }
  0x25   :  { %100 = vmatprep.subr.mxu0 %v87_v7  ;;  %1990 = vmatprep.subr.mxu1 %v87_v7  ;;  %v70_v24 = vld [vmem:[#allocation5 + $0x40] sm:$0xff]  ;;  %v69_v25 = vld [vmem:[#allocation5 + $0x38] sm:$0xff]  ;;  %v68_v26 = vld [vmem:[#allocation5 + $0x30] sm:$0xff] }
  0x26   :  { %101 = vmatpush1.msra.mxu0 %v86_v8  ;;  %2006 = vmatpush1.msra.mxu1 %v86_v8  ;;  %v67_v27 = vld [vmem:[#allocation5 + $0x28] sm:$0xff]  ;;  %v66_v28 = vld [vmem:[#allocation5 + $0x20] sm:$0xff]  ;;  %v65_v29 = vld [vmem:[#allocation5 + $0x18] sm:$0xff] }
  0x27   :  { %102 = vmatprep.subr.mxu0 %v85_v9  ;;  %1991 = vmatprep.subr.mxu1 %v85_v9  ;;  %v64_v30 = vld [vmem:[#allocation5 + $0x10] sm:$0xff]  ;;  %v63_v31 = vld [vmem:[#allocation5 + $0x8] sm:$0xff]  ;;  %v62_v32 = vld [vmem:[#allocation5] sm:$0xff] }
  0x28   :  { %103 = vmatpush1.msra.mxu0 %v84_v10  ;;  %2007 = vmatpush1.msra.mxu1 %v84_v10  ;;  %v46_v33 = vld [vmem:[#allocation2] sm:$0xff]  ;;  %v47_v35 = vld [vmem:[#allocation2 + $0x8] sm:$0xff]  ;;  %v48_v37 = vld [vmem:[#allocation2 + $0x10] sm:$0xff] }
  0x29   :  { %104 = vmatprep.subr.mxu0 %v83_v11  ;;  %1992 = vmatprep.subr.mxu1 %v83_v11  ;;  %v54_v34 = vld [vmem:[#allocation2 + $0x40] sm:$0xff]  ;;  %v55_v36 = vld [vmem:[#allocation2 + $0x48] sm:$0xff]  ;;  %v56_v38 = vld [vmem:[#allocation2 + $0x50] sm:$0xff] }
  0x2a   :  { %105 = vmatpush1.msra.mxu0 %v82_v12  ;;  %2008 = vmatpush1.msra.mxu1 %v82_v12  ;;  %v49_v39 = vld [vmem:[#allocation2 + $0x18] sm:$0xff]  ;;  %v50_v41 = vld [vmem:[#allocation2 + $0x20] sm:$0xff]  ;;  %v51_v46 = vld [vmem:[#allocation2 + $0x28] sm:$0xff] }
  0x2b   :  { %106 = vmatprep.subr.mxu0 %v81_v13  ;;  %1993 = vmatprep.subr.mxu1 %v81_v13  ;;  %v57_v40 = vld [vmem:[#allocation2 + $0x58] sm:$0xff]  ;;  %v58_v42 = vld [vmem:[#allocation2 + $0x60] sm:$0xff]  ;;  %v59_v47 = vld [vmem:[#allocation2 + $0x68] sm:$0xff] }
  0x2c   :  { %107 = vmatpush1.msra.mxu0 %v80_v14  ;;  %2009 = vmatpush1.msra.mxu1 %v80_v14  ;;  %v52_v58 = vld [vmem:[#allocation2 + $0x30] sm:$0xff]  ;;  %v53_v13 = vld [vmem:[#allocation2 + $0x38] sm:$0xff] }
  0x2d   :  { %108 = vmatprep.subr.mxu0 %v79_v15  ;;  %1994 = vmatprep.subr.mxu1 %v79_v15  ;;  %v60_v59 = vld [vmem:[#allocation2 + $0x70] sm:$0xff]  ;;  %v61_v14 = vld [vmem:[#allocation2 + $0x78] sm:$0xff] }
  0x2e   :  { %109 = vmatpush1.msra.mxu0 %v78_v16  ;;  %2010 = vmatpush1.msra.mxu1 %v78_v16 }
  0x2f   :  { %110 = vmatprep.subr.mxu0 %v77_v17  ;;  %1995 = vmatprep.subr.mxu1 %v77_v17 }
  0x30   :  { %111 = vmatpush1.msra.mxu0 %v76_v18  ;;  %2011 = vmatpush1.msra.mxu1 %v76_v18 }
  0x31   :  { %112 = vmatprep.subr.mxu0 %v75_v19  ;;  %1996 = vmatprep.subr.mxu1 %v75_v19 }
  0x32   :  { %113 = vmatpush1.msra.mxu0 %v74_v20  ;;  %2012 = vmatpush1.msra.mxu1 %v74_v20 }
  0x33   :  { %114 = vmatprep.subr.mxu0 %v73_v21  ;;  %1997 = vmatprep.subr.mxu1 %v73_v21 }
  0x34   :  { %115 = vmatpush1.msra.mxu0 %v72_v22  ;;  %2013 = vmatpush1.msra.mxu1 %v72_v22 }
  0x35   :  { %116 = vmatprep.subr.mxu0 %v71_v23  ;;  %1998 = vmatprep.subr.mxu1 %v71_v23 }
  0x36   :  { %117 = vmatpush1.msra.mxu0 %v70_v24  ;;  %2014 = vmatpush1.msra.mxu1 %v70_v24 }
  0x37   :  { %118 = vmatprep.subr.mxu0 %v69_v25  ;;  %1999 = vmatprep.subr.mxu1 %v69_v25 }
  0x38   :  { %119 = vmatpush1.msra.mxu0 %v68_v26  ;;  %2015 = vmatpush1.msra.mxu1 %v68_v26 }
  0x39   :  { %120 = vmatprep.subr.mxu0 %v67_v27  ;;  %2000 = vmatprep.subr.mxu1 %v67_v27 }
  0x3a   :  { %121 = vmatpush1.msra.mxu0 %v66_v28  ;;  %2016 = vmatpush1.msra.mxu1 %v66_v28 }
  0x3b   :  { %122 = vmatprep.subr.mxu0 %v65_v29  ;;  %2001 = vmatprep.subr.mxu1 %v65_v29 }
  0x3c   :  { %123 = vmatpush1.msra.mxu0 %v64_v30  ;;  %2017 = vmatpush1.msra.mxu1 %v64_v30 }
  0x3d   :  { %124 = vmatprep.subr.mxu0 %v63_v31  ;;  %2002 = vmatprep.subr.mxu1 %v63_v31 }
  0x3e   :  { %125 = vmatpush1.msra.mxu0 %v62_v32  ;;  %2018 = vmatpush1.msra.mxu1 %v62_v32 }
  0x3f   :  { %159 = vmatmul.mubr.f32.vlgmr.msra.gmra.mxu0 %v46_v33  ;;  %207 = vmatmul.mubr.f32.vlgmr.msra.gmra.mxu1 %v54_v34 }
  0x40   :  { %164 = vmatprep.mubr.f32.mxu0 %v2232_v0  ;;  %212 = vmatprep.mubr.f32.mxu1 %v2232_v0 }
  0x43   :  { %165 = vmatmul.mubr.f32.gmra.mxu0 %v47_v35  ;;  %213 = vmatmul.mubr.f32.gmra.mxu1 %v55_v36 }
  0x44   :  { %170 = vmatprep.mubr.f32.mxu0 %v2232_v0  ;;  %218 = vmatprep.mubr.f32.mxu1 %v2232_v0 }
  0x47   :  { %171 = vmatmul.mubr.f32.gmra.mxu0 %v48_v37  ;;  %219 = vmatmul.mubr.f32.gmra.mxu1 %v56_v38 }
  0x48   :  { %176 = vmatprep.mubr.f32.mxu0 %v2232_v0  ;;  %224 = vmatprep.mubr.f32.mxu1 %v2232_v0 }
  0x4b   :  { %177 = vmatmul.mubr.f32.gmra.mxu0 %v49_v39  ;;  %225 = vmatmul.mubr.f32.gmra.mxu1 %v57_v40 }
  0x4c   :  { %182 = vmatprep.mubr.f32.mxu0 %v2232_v0  ;;  %230 = vmatprep.mubr.f32.mxu1 %v2232_v0 }
  0x4f   :  { %183 = vmatmul.mubr.f32.gmra.mxu0 %v50_v41  ;;  %231 = vmatmul.mubr.f32.gmra.mxu1 %v58_v42 }
  0x50   :  { %188 = vmatprep.mubr.f32.mxu0 %v2232_v0  ;;  %236 = vmatprep.mubr.f32.mxu1 %v2232_v0 }
  0x53   :  { %189 = vmatmul.mubr.f32.gmra.mxu0 %v51_v46  ;;  %237 = vmatmul.mubr.f32.gmra.mxu1 %v59_v47 }
  0x54   :  { %194 = vmatprep.mubr.f32.mxu0 %v2232_v0  ;;  %242 = vmatprep.mubr.f32.mxu1 %v2232_v0 }
  0x57   :  { %195 = vmatmul.mubr.f32.gmra.mxu0 %v52_v58  ;;  %243 = vmatmul.mubr.f32.gmra.mxu1 %v60_v59 }
  0x58   :  { %200 = vmatprep.mubr.f32.mxu0 %v2232_v0  ;;  %248 = vmatprep.mubr.f32.mxu1 %v2232_v0 }
  0x5b   :  { %201 = vmatmul.mubr.f32.gmra.mxu0 %v53_v13  ;;  %249 = vmatmul.mubr.f32.gmra.mxu1 %v61_v14 }
  0xff   :  { %v2281_v43 = vpop.f32.mrf.mxu0  ;;  %v2283_v44 = vpop.f32.mrf.mxu1 }
 0x100   :  { %3795 = vst [vmem:[#allocation11_spill] sm:$0xff] %v2281_v43  ;;  %3796 = vst [vmem:[#allocation12_spill] sm:$0xff] %v2283_v44  ;;  %574 = vrot.lane.b32.xlu0 %v2281_v43, %s2233_s0  ;;  %v258_v51 = vsel %vm257_vm0, %v2281_v43, 0.0  ;;  %v282_v52 = vsel %vm257_vm0, %v2283_v44, 0.0  ;;  %v322_v54 = vmul.f32 %v2281_v43, %v2281_v43  ;;  %v330_v56 = vmul.f32 %v2283_v44, %v2283_v44 }
 0x101   :  { %v2287_v45 = vpop.f32.mrf.mxu0  ;;  %v2291_v49 = vpop.f32.mrf.mxu1 }
 0x102   :  { %v338_v60 = vsel %vm257_vm0, %v322_v54, 0.0  ;;  %v362_v61 = vsel %vm257_vm0, %v330_v56, 0.0  ;;  %v1118_v63 = vsel %vm257_vm0, %v2287_v45, 0.0  ;;  %v1142_v0 = vsel %vm257_vm0, %v2291_v49, 0.0 }
 0x103   :  { %v2289_v48 = vpop.f32.mrf.mxu0  ;;  %v2299_v50 = vpop.f32.mrf.mxu1  ;;  %v2341_v6 = vmul.f32 %v2287_v45, %v2287_v45  ;;  %v2349_v9 = vmul.f32 %v2291_v49, %v2291_v49 }
 0x104   :  { %3797 = vst [vmem:[#allocation13_spill] sm:$0xff] %v2289_v48  ;;  %590 = vrot.lane.b32.xlu0 %v2283_v44, %s2233_s0  ;;  %576 = vrot.lane.b32.xlu1 %v2289_v48, %s2233_s0  ;;  %3798 = vst [vmem:[#allocation14_spill] sm:$0xff] %v2299_v50  ;;  %v285_v53 = vsel %vm257_vm0, %v2299_v50, 0.0  ;;  %v323_v55 = vmul.f32 %v2289_v48, %v2289_v48  ;;  %v331_v57 = vmul.f32 %v2299_v50, %v2299_v50 }
 0x105   :  { %v2329_v2 = vpop.f32.mrf.mxu0  ;;  %v2335_v4 = vpop.f32.mrf.mxu1  ;;  %v261_v5 = vsel %vm257_vm0, %v2289_v48, 0.0  ;;  %v1198_v8 = vsel %vm257_vm0, %v2341_v6, 0.0  ;;  %v1222_v10 = vsel %vm257_vm0, %v2349_v9, 0.0 }
 0x106   :  { %v341_v62 = vsel %vm257_vm0, %v323_v55, 0.0  ;;  %v365_v1 = vsel %vm257_vm0, %v331_v57, 0.0  ;;  %3799 = vst [vmem:[#allocation15_spill] sm:$0xff] %v2329_v2  ;;  %v1121_v3 = vsel %vm257_vm0, %v2329_v2, 0.0  ;;  %3800 = vst [vmem:[#allocation16_spill] sm:$0xff] %v2335_v4  ;;  %v1145_v7 = vsel %vm257_vm0, %v2335_v4, 0.0 }
 0x107   :  { %v2353_v11 = vpop.f32.mrf.mxu0  ;;  %v2357_v12 = vpop.f32.mrf.mxu1  ;;  %v2365_v16 = vmul.f32 %v2329_v2, %v2329_v2  ;;  %v2371_v18 = vmul.f32 %v2335_v4, %v2335_v4 }
 0x108   :  { %592 = vrot.lane.b32.xlu1 %v2299_v50, %s2233_s0  ;;  %3801 = vst [vmem:[#allocation17_spill] sm:$0xff] %v2353_v11  ;;  %3802 = vst [vmem:[#allocation18_spill] sm:$0xff] %v2357_v12  ;;  %v264_v15 = vsel %vm257_vm0, %v2353_v11, 0.0  ;;  %v288_v19 = vsel %vm257_vm0, %v2357_v12, 0.0  ;;  %v324_v21 = vmul.f32 %v2353_v11, %v2353_v11  ;;  %v332_v22 = vmul.f32 %v2357_v12, %v2357_v12 }
 0x109   :  { %v1201_v17 = vsel %vm257_vm0, %v2365_v16, 0.0  ;;  %v1225_v20 = vsel %vm257_vm0, %v2371_v18, 0.0  ;;  %v2382_v23 = vpop.f32.mrf.mxu0  ;;  %v2386_v25 = vpop.f32.mrf.mxu1 }
 0x10a   :  { %3803 = vst [vmem:[#allocation19_spill] sm:$0xff] %v2382_v23  ;;  %v344_v27 = vsel %vm257_vm0, %v324_v21, 0.0  ;;  %v368_v28 = vsel %vm257_vm0, %v332_v22, 0.0  ;;  %v1124_v29 = vsel %vm257_vm0, %v2382_v23, 0.0  ;;  %v1148_v31 = vsel %vm257_vm0, %v2386_v25, 0.0 }
 0x10b   :  { %v2384_v24 = vpop.f32.mrf.mxu0  ;;  %v2391_v26 = vpop.f32.mrf.mxu1  ;;  %v2405_v32 = vmul.f32 %v2382_v23, %v2382_v23  ;;  %v2413_v35 = vmul.f32 %v2386_v25, %v2386_v25 }
 0x10c   :  { %3804 = vst [vmem:[#allocation20_spill] sm:$0xff] %v2384_v24  ;;  %3805 = vst [vmem:[#allocation21_spill] sm:$0xff] %v2391_v26  ;;  %v267_v30 = vsel %vm257_vm0, %v2384_v24, 0.0  ;;  %v291_v33 = vsel %vm257_vm0, %v2391_v26, 0.0  ;;  %v325_v39 = vmul.f32 %v2384_v24, %v2384_v24  ;;  %v333_v40 = vmul.f32 %v2391_v26, %v2391_v26 }
 0x10d   :  { %v1204_v34 = vsel %vm257_vm0, %v2405_v32, 0.0  ;;  %v1228_v36 = vsel %vm257_vm0, %v2413_v35, 0.0  ;;  %v2417_v37 = vpop.f32.mrf.mxu0  ;;  %v2429_v42 = vpop.f32.mrf.mxu1 }
 0x10e   :  { %3806 = vst [vmem:[#allocation22_spill] sm:$0xff] %v2417_v37  ;;  %v1127_v38 = vsel %vm257_vm0, %v2417_v37, 0.0  ;;  %3808 = vst [vmem:[#allocation24_spill] sm:$0xff] %v2429_v42  ;;  %v347_v47 = vsel %vm257_vm0, %v325_v39, 0.0 }
 0x10f   :  { %v2427_v41 = vpop.f32.mrf.mxu0  ;;  %v2433_v46 = vpop.f32.mrf.mxu1 }
 0x110   :  { %3807 = vst [vmem:[#allocation23_spill] sm:$0xff] %v2427_v41  ;;  %3809 = vst [vmem:[#allocation25_spill] sm:$0xff] %v2433_v46 }
 0x111   :  { %v2457_v59 = vpop.f32.mrf.mxu0 }
 0x112   :  { %v2489_v14 = vmul.f32 %v2457_v59, %v2457_v59 }
 0x123   :  { %259 = vadd.xlane.f32.xlu0 %v258_v51  ;;  %v371_v51 = vsel %vm257_vm0, %v333_v40, 0.0 }
 0x127   :  { %283 = vadd.xlane.f32.xlu0 %v282_v52  ;;  %v1151_v52 = vsel %vm257_vm0, %v2429_v42, 0.0 }
 0x12c   :  { %286 = vadd.xlane.f32.xlu1 %v285_v53  ;;  %v2443_v53 = vmul.f32 %v2417_v37, %v2417_v37 }
 0x13d   :  { %702 = vrot.lane.b32.xlu0 %v322_v54, %s2233_s0  ;;  %704 = vrot.lane.b32.xlu1 %v323_v55, %s2233_s0  ;;  %v270_v54 = vsel %vm257_vm0, %v2427_v41, 0.0  ;;  %v1207_v55 = vsel %vm257_vm0, %v2443_v53, 0.0 }
 0x141   :  { %718 = vrot.lane.b32.xlu0 %v330_v56, %s2233_s0  ;;  %720 = vrot.lane.b32.xlu1 %v331_v57, %s2233_s0  ;;  %v2451_v56 = vmul.f32 %v2429_v42, %v2429_v42  ;;  %v294_v57 = vsel %vm257_vm0, %v2433_v46, 0.0 }
 0x143   :  { %v1231_v58 = vsel %vm257_vm0, %v2451_v56, 0.0 }
 0x160   :  { %339 = vadd.xlane.f32.xlu0 %v338_v60  ;;  %v2459_v60 = vpop.f32.mrf.mxu0 }
 0x161   :  { %3810 = vst [vmem:[#allocation26_spill] sm:$0xff] %v2459_v60 }
 0x164   :  { %363 = vadd.xlane.f32.xlu0 %v362_v61  ;;  %v2461_v61 = vpop.f32.mrf.mxu1 }
 0x165   :  { %342 = vadd.xlane.f32.xlu1 %v341_v62  ;;  %v326_v62 = vmul.f32 %v2427_v41, %v2427_v41  ;;  %v1154_v13 = vsel %vm257_vm0, %v2461_v61, 0.0 }
 0x168   :  { %1119 = vadd.xlane.f32.xlu0 %v1118_v63  ;;  %v2467_v63 = vpop.f32.mrf.mxu1 }
 0x169   :  { %366 = vadd.xlane.f32.xlu1 %v365_v1  ;;  %3811 = vst [vmem:[#allocation27_spill] sm:$0xff] %v2467_v63  ;;  %v334_v1 = vmul.f32 %v2433_v46, %v2433_v46 }
 0x16c   :  { %1143 = vadd.xlane.f32.xlu0 %v1142_v0  ;;  %v350_v0 = vsel %vm257_vm0, %v326_v62, 0.0 }
 0x16d   :  { %1122 = vadd.xlane.f32.xlu1 %v1121_v3  ;;  %v273_v3 = vsel %vm257_vm0, %v2459_v60, 0.0 }
 0x170   :  { %262 = vadd.xlane.f32.xlu0 %v261_v5  ;;  %v374_v5 = vsel %vm257_vm0, %v334_v1, 0.0 }
 0x171   :  { %1146 = vadd.xlane.f32.xlu1 %v1145_v7  ;;  %v297_v7 = vsel %vm257_vm0, %v2467_v63, 0.0 }
 0x174   :  { %1199 = vadd.xlane.f32.xlu0 %v1198_v8  ;;  %v2481_v8 = vpop.permute.xlu0 %574 }
 0x178   :  { %1223 = vadd.xlane.f32.xlu0 %v1222_v10  ;;  %v1130_v10 = vsel %vm257_vm0, %v2457_v59, 0.0 }
 0x182   :  { %578 = vrot.lane.b32.xlu1 %v2353_v11, %s2233_s0 }
 0x18e   :  { %594 = vrot.lane.b32.xlu0 %v2357_v12, %s2233_s0  ;;  %v622_v12 = vsel %vm257_vm0, %v2481_v8, 0.0 }
 0x1a6   :  { %265 = vadd.xlane.f32.xlu1 %v264_v15  ;;  %v2491_v15 = vpop.permute.xlu0 %590 }
 0x1aa   :  { %1202 = vadd.xlane.f32.xlu1 %v1201_v17  ;;  %v1210_v17 = vsel %vm257_vm0, %v2489_v14, 0.0 }
 0x1ad   :  { %289 = vadd.xlane.f32.xlu0 %v288_v19  ;;  %v2497_v19 = vmul.f32 %v2461_v61, %v2461_v61 }
 0x1ae   :  { %1226 = vadd.xlane.f32.xlu1 %v1225_v20  ;;  %v2499_v20 = vpop.xlane.xlu0 %259 }
 0x1bf   :  { %706 = vrot.lane.b32.xlu1 %v324_v21, %s2233_s0  ;;  %v1234_v21 = vsel %vm257_vm0, %v2497_v19, 0.0 }
 0x1c3   :  { %722 = vrot.lane.b32.xlu0 %v332_v22, %s2233_s0  ;;  %580 = vrot.lane.b32.xlu1 %v2384_v24, %s2233_s0  ;;  %v327_v22 = vmul.f32 %v2459_v60, %v2459_v60 }
 0x1c7   :  { %596 = vrot.lane.b32.xlu1 %v2391_v26, %s2233_s0 }
 0x1e2   :  { %345 = vadd.xlane.f32.xlu0 %v344_v27  ;;  %v2505_v27 = vpop.xlane.xlu0 %283 }
 0x1e6   :  { %369 = vadd.xlane.f32.xlu0 %v368_v28  ;;  %v335_v28 = vmul.f32 %v2467_v63, %v2467_v63 }
 0x1ea   :  { %1125 = vadd.xlane.f32.xlu0 %v1124_v29  ;;  %v2511_v29 = vpop.permute.xlu0 %702 }
 0x1eb   :  { %268 = vadd.xlane.f32.xlu1 %v267_v30 }
 0x1ee   :  { %1149 = vadd.xlane.f32.xlu0 %v1148_v31  ;;  %v2513_v30 = vpop.permute.xlu0 %718  ;;  %v2515_v31 = vpop.f32.mrf.mxu0 }
 0x1ef   :  { %292 = vadd.xlane.f32.xlu1 %v291_v33  ;;  %3812 = vst [vmem:[#allocation28_spill] sm:$0xff] %v2515_v31 }
 0x1f2   :  { %1205 = vadd.xlane.f32.xlu0 %v1204_v34  ;;  %v2517_v33 = vpop.xlane.xlu0 %339  ;;  %v2519_v34 = vpop.f32.mrf.mxu0 }
 0x1f3   :  { %3813 = vst [vmem:[#allocation29_spill] sm:$0xff] %v2519_v34 }
 0x1f6   :  { %1229 = vadd.xlane.f32.xlu0 %v1228_v36  ;;  %v2521_v36 = vpop.f32.mrf.mxu1 }
 0x1f7   :  { %3814 = vst [vmem:[#allocation30_spill] sm:$0xff] %v2521_v36 }
 0x1fa   :  { %1128 = vadd.xlane.f32.xlu0 %v1127_v38  ;;  %v2525_v38 = vpop.f32.mrf.mxu1 }
 0x1fb   :  { %3815 = vst [vmem:[#allocation31_spill] sm:$0xff] %v2525_v38  ;;  %v336_v26 = vmul.f32 %v2525_v38, %v2525_v38 }
 0x200   :  { %708 = vrot.lane.b32.xlu1 %v325_v39, %s2233_s0  ;;  %v2527_v39 = vpop.xlane.xlu0 %363 }
 0x204   :  { %724 = vrot.lane.b32.xlu1 %v333_v40, %s2233_s0  ;;  %v2531_v40 = vpop.permute.xlu1 %576 }
 0x210   :  { %582 = vrot.lane.b32.xlu0 %v2427_v41, %s2233_s0 }
 0x214   :  { %598 = vrot.lane.b32.xlu0 %v2433_v46, %s2233_s0 }
 0x228   :  { %348 = vadd.xlane.f32.xlu1 %v347_v47  ;;  %v2533_v47 = vpop.xlane.xlu0 %1119 }
 0x229   :  { %3816 = vst [vmem:[#allocation32_spill] sm:$0xff] %v2533_v47 }
 0x22c   :  { %372 = vadd.xlane.f32.xlu1 %v371_v51  ;;  %v2535_v51 = vpop.permute.xlu1 %592 }
 0x230   :  { %1152 = vadd.xlane.f32.xlu1 %v1151_v52  ;;  %v2537_v52 = vpop.xlane.xlu0 %1143 }
 0x231   :  { %3817 = vst [vmem:[#allocation33_spill] sm:$0xff] %v2537_v52 }
 0x233   :  { %271 = vadd.xlane.f32.xlu0 %v270_v54  ;;  %v2539_v54 = vpop.xlane.xlu1 %286 }
 0x234   :  { %1208 = vadd.xlane.f32.xlu1 %v1207_v55  ;;  %3818 = vst [vmem:[#allocation34_spill] sm:$0xff] %v2539_v54  ;;  %v353_v55 = vsel %vm257_vm0, %v327_v22, 0.0 }
 0x237   :  { %295 = vadd.xlane.f32.xlu0 %v294_v57  ;;  %v2542_v57 = vpop.xlane.xlu0 %262 }
 0x238   :  { %1232 = vadd.xlane.f32.xlu1 %v1231_v58  ;;  %3819 = vst [vmem:[#allocation35_spill] sm:$0xff] %v2542_v57  ;;  %v2544_v58 = vpop.permute.xlu1 %704 }
 0x249   :  { %584 = vrot.lane.b32.xlu1 %v2459_v60, %s2233_s0 }
 0x24d   :  { %710 = vrot.lane.b32.xlu0 %v326_v62, %s2233_s0  ;;  %600 = vrot.lane.b32.xlu1 %v2467_v63, %s2233_s0  ;;  %v377_v62 = vsel %vm257_vm0, %v335_v28, 0.0  ;;  %v2593_v63 = vpop.f32.mrf.mxu1 }
 0x24e   :  { %3828 = vst [vmem:[#allocation44_spill] sm:$0xff] %v2593_v63 }
 0x24f   :  { %v2603_v60 = vpop.f32.mrf.mxu1 }
 0x250   :  { %3829 = vst [vmem:[#allocation45_spill] sm:$0xff] %v2603_v60 }
 0x251   :  { %726 = vrot.lane.b32.xlu0 %v334_v1, %s2233_s0  ;;  %v2547_v1 = vpop.xlane.xlu0 %1199 }
 0x252   :  { %3820 = vst [vmem:[#allocation36_spill] sm:$0xff] %v2547_v1 }
 0x270   :  { %351 = vadd.xlane.f32.xlu0 %v350_v0  ;;  %v1133_v0 = vsel %vm257_vm0, %v2515_v31, 0.0 }
 0x271   :  { %274 = vadd.xlane.f32.xlu1 %v273_v3  ;;  %v2551_v3 = vpop.permute.xlu1 %720 }
 0x274   :  { %375 = vadd.xlane.f32.xlu0 %v374_v5  ;;  %v1157_v5 = vsel %vm257_vm0, %v2521_v36, 0.0 }
 0x275   :  { %298 = vadd.xlane.f32.xlu1 %v297_v7  ;;  %v2557_v7 = vmul.f32 %v2515_v31, %v2515_v31 }
 0x278   :  { %1131 = vadd.xlane.f32.xlu0 %v1130_v10  ;;  %v2559_v10 = vpop.xlane.xlu0 %1223 }
 0x279   :  { %3821 = vst [vmem:[#allocation37_spill] sm:$0xff] %v2559_v10 }
 0x27c   :  { %1155 = vadd.xlane.f32.xlu0 %v1154_v13  ;;  %v276_v13 = vsel %vm257_vm0, %v2519_v34, 0.0 }
 0x280   :  { %1211 = vadd.xlane.f32.xlu0 %v1210_v17  ;;  %v2563_v17 = vpop.xlane.xlu1 %342 }
 0x281   :  { %3822 = vst [vmem:[#allocation38_spill] sm:$0xff] %v2563_v17 }
 0x284   :  { %1235 = vadd.xlane.f32.xlu0 %v1234_v21  ;;  %v1213_v21 = vsel %vm257_vm0, %v2557_v7, 0.0 }
 0x286   :  { %712 = vrot.lane.b32.xlu1 %v327_v22, %s2233_s0  ;;  %v2569_v22 = vmul.f32 %v2521_v36, %v2521_v36 }
 0x28a   :  { %728 = vrot.lane.b32.xlu1 %v335_v28, %s2233_s0  ;;  %v2571_v28 = vpop.permute.xlu0 %594 }
 0x29a   :  { %586 = vrot.lane.b32.xlu0 %v2519_v34, %s2233_s0 }
 0x29e   :  { %602 = vrot.lane.b32.xlu0 %v2525_v38, %s2233_s0 }
 0x2ae   :  { %354 = vadd.xlane.f32.xlu1 %v353_v55  ;;  %v300_v55 = vsel %vm257_vm0, %v2525_v38, 0.0 }
 0x2b2   :  { %378 = vadd.xlane.f32.xlu1 %v377_v62  ;;  %v2575_v62 = vpop.xlane.xlu1 %366 }
 0x2b3   :  { %3823 = vst [vmem:[#allocation39_spill] sm:$0xff] %v2575_v62 }
 0x2b6   :  { %1134 = vadd.xlane.f32.xlu1 %v1133_v0  ;;  %v1237_v0 = vsel %vm257_vm0, %v2569_v22, 0.0 }
 0x2ba   :  { %1158 = vadd.xlane.f32.xlu1 %v1157_v5  ;;  %v2579_v5 = vpop.xlane.xlu0 %289 }
 0x2bd   :  { %277 = vadd.xlane.f32.xlu0 %v276_v13  ;;  %v2581_v13 = vpop.xlane.xlu1 %1122 }
 0x2be   :  { %1214 = vadd.xlane.f32.xlu1 %v1213_v21  ;;  %3824 = vst [vmem:[#allocation40_spill] sm:$0xff] %v2581_v13  ;;  %v2583_v10 = vpop.permute.xlu0 %722  ;;  %v2589_v21 = vpop.f32.mrf.mxu0  ;;  %v328_v13 = vmul.f32 %v2519_v34, %v2519_v34 }
 0x2c0   :  { %v2591_v47 = vpop.f32.mrf.mxu0 }
 0x2c1   :  { %301 = vadd.xlane.f32.xlu0 %v300_v55  ;;  %v2585_v52 = vpop.xlane.xlu1 %1146  ;;  %3827 = vst [vmem:[#allocation43_spill] sm:$0xff] %v2591_v47 }
 0x2c2   :  { %1238 = vadd.xlane.f32.xlu1 %v1237_v0  ;;  %3825 = vst [vmem:[#allocation41_spill] sm:$0xff] %v2585_v52  ;;  %v2587_v1 = vpop.xlane.xlu0 %345 }
 0x2c3   :  { %3826 = vst [vmem:[#allocation42_spill] sm:$0xff] %v2587_v1 }
 0x2c5   :  { %v2597_v55 = vpop.permute.xlu1 %578 }
 0x2c6   :  { %v2599_v0 = vpop.xlane.xlu0 %369 }
 0x2c9   :  { %v2608_v52 = vpop.xlane.xlu1 %265 }
 0x2ca   :  { %3830 = vst [vmem:[#allocation46_spill] sm:$0xff] %v2608_v52  ;;  %v2612_v24 = vpop.xlane.xlu0 %1125 }
 0x2cb   :  { %3831 = vst [vmem:[#allocation47_spill] sm:$0xff] %v2612_v24  ;;  %v356_v24 = vsel %vm257_vm0, %v328_v13, 0.0 }
 0x2cd   :  { %v2615_v50 = vpop.xlane.xlu1 %1202 }
 0x2ce   :  { %3832 = vst [vmem:[#allocation48_spill] sm:$0xff] %v2615_v50  ;;  %v2617_v48 = vpop.xlane.xlu0 %1149 }
 0x2cf   :  { %3833 = vst [vmem:[#allocation49_spill] sm:$0xff] %v2617_v48 }
 0x2d1   :  { %v2619_v11 = vpop.xlane.xlu1 %1226 }
 0x2d2   :  { %3834 = vst [vmem:[#allocation50_spill] sm:$0xff] %v2619_v11  ;;  %v2621_v34 = vpop.xlane.xlu0 %1205  ;;  %v279_v11 = vsel %vm257_vm0, %v2591_v47, 0.0 }
 0x2d3   :  { %588 = vrot.lane.b32.xlu1 %v2591_v47, %s2233_s0  ;;  %3835 = vst [vmem:[#allocation51_spill] sm:$0xff] %v2621_v34  ;;  %v380_v34 = vsel %vm257_vm0, %v336_v26, 0.0 }
 0x2d5   :  { %v707_v46 = vpop.permute.xlu1 %706 }
 0x2d6   :  { %v2623_v41 = vpop.xlane.xlu0 %1229 }
 0x2d7   :  { %714 = vrot.lane.b32.xlu0 %v328_v13, %s2233_s0  ;;  %604 = vrot.lane.b32.xlu1 %v2603_v60, %s2233_s0  ;;  %3836 = vst [vmem:[#allocation52_spill] sm:$0xff] %v2623_v41  ;;  %v1136_v13 = vsel %vm257_vm0, %v2589_v21, 0.0 }
 0x2d9   :  { %v581_v62 = vpop.permute.xlu1 %580 }
 0x2da   :  { %v2625_v17 = vpop.xlane.xlu0 %1128 }
 0x2db   :  { %730 = vrot.lane.b32.xlu0 %v336_v26, %s2233_s0  ;;  %3837 = vst [vmem:[#allocation53_spill] sm:$0xff] %v2625_v17  ;;  %v303_v17 = vsel %vm257_vm0, %v2603_v60, 0.0 }
 0x2dd   :  { %v2627_v54 = vpop.permute.xlu1 %596 }
 0x2de   :  { %v2629_v38 = vpop.permute.xlu0 %582 }
 0x2e1   :  { %v2632_v1 = vpop.xlane.xlu1 %268 }
 0x2e2   :  { %3838 = vst [vmem:[#allocation54_spill] sm:$0xff] %v2632_v1  ;;  %v2636_v50 = vpop.permute.xlu0 %598 }
 0x2e5   :  { %v2641_v41 = vpop.xlane.xlu1 %292 }
 0x2e6   :  { %3839 = vst [vmem:[#allocation55_spill] sm:$0xff] %v2641_v41  ;;  %v2645_v48 = vpop.xlane.xlu0 %271  ;;  %v2659_v41 = vmul.f32 %v2593_v63, %v2593_v63 }
 0x2e8   :  { %v1240_v1 = vsel %vm257_vm0, %v2659_v41, 0.0 }
 0x2e9   :  { %v709_v26 = vpop.permute.xlu1 %708 }
 0x2fa   :  { %357 = vadd.xlane.f32.xlu0 %v356_v24  ;;  %v2651_v24 = vmul.f32 %v2589_v21, %v2589_v21 }
 0x2fb   :  { %280 = vadd.xlane.f32.xlu1 %v279_v11  ;;  %v1160_v11 = vsel %vm257_vm0, %v2593_v63, 0.0 }
 0x2fe   :  { %381 = vadd.xlane.f32.xlu0 %v380_v34  ;;  %v2653_v34 = vpop.xlane.xlu0 %295 }
 0x2ff   :  { %304 = vadd.xlane.f32.xlu1 %v303_v17  ;;  %3840 = vst [vmem:[#allocation56_spill] sm:$0xff] %v2653_v34  ;;  %v1216_v17 = vsel %vm257_vm0, %v2651_v24, 0.0 }
 0x302   :  { %1137 = vadd.xlane.f32.xlu0 %v1136_v13  ;;  %v2661_v13 = vpop.permute.xlu1 %724  ;;  %v711_v52 = vpop.permute.xlu0 %710 }
 0x306   :  { %1161 = vadd.xlane.f32.xlu0 %v1160_v11  ;;  %v329_v11 = vmul.f32 %v2591_v47, %v2591_v47  ;;  %v2667_v57 = vpop.xlane.xlu1 %348  ;;  %v727_v34 = vpop.permute.xlu0 %726 }
 0x307   :  { %3841 = vst [vmem:[#allocation57_spill] sm:$0xff] %v2667_v57  ;;  %v750_v57 = vsel %vm257_vm0, %v2511_v29, 0.0  ;;  %v652_v29 = vsel %vm257_vm0, %v2571_v28, 0.0 }
 0x30a   :  { %1217 = vadd.xlane.f32.xlu0 %v1216_v17  ;;  %v337_v17 = vmul.f32 %v2603_v60, %v2603_v60  ;;  %v2677_v44 = vpop.xlane.xlu1 %372  ;;  %v2679_v47 = vpop.xlane.xlu0 %351 }
 0x30e   :  { %1241 = vadd.xlane.f32.xlu0 %v1240_v1  ;;  %v646_v1 = vsel %vm257_vm0, %v2491_v15, 0.0  ;;  %v2683_v8 = vpop.xlane.xlu1 %1152  ;;  %v2687_v60 = vpop.xlane.xlu0 %375  ;;  %v628_v15 = vsel %vm257_vm0, %v2597_v55, 0.0 }
 0x30f   :  { %3842 = vst [vmem:[#allocation58_spill] sm:$0xff] %v2683_v8  ;;  %v756_v8 = vsel %vm257_vm0, %v707_v46, 0.0  ;;  %v359_v46 = vsel %vm257_vm0, %v329_v11, 0.0 }
 0x310   :  { %716 = vrot.lane.b32.xlu1 %v329_v11, %s2233_s0 }
 0x312   :  { %623 = vadd.xlane.f32.xlu0 %v622_v12  ;;  %v774_v12 = vsel %vm257_vm0, %v2513_v30, 0.0  ;;  %v2691_v43 = vpop.xlane.xlu1 %1208 }
 0x313   :  { %3843 = vst [vmem:[#allocation59_spill] sm:$0xff] %v2691_v43  ;;  %v631_v43 = vsel %vm257_vm0, %v581_v62, 0.0  ;;  %v383_v62 = vsel %vm257_vm0, %v337_v17, 0.0 }
 0x314   :  { %732 = vrot.lane.b32.xlu1 %v337_v17, %s2233_s0 }
 0x316   :  { %647 = vadd.xlane.f32.xlu0 %v646_v1  ;;  %v2693_v1 = vpop.xlane.xlu0 %1131 }
 0x317   :  { %3844 = vst [vmem:[#allocation60_spill] sm:$0xff] %v2693_v1 }
 0x31a   :  { %751 = vadd.xlane.f32.xlu0 %v750_v57  ;;  %v2697_v57 = vpop.xlane.xlu1 %1232  ;;  %v2700_v30 = vpop.xlane.xlu0 %1155 }
 0x31b   :  { %3845 = vst [vmem:[#allocation61_spill] sm:$0xff] %v2697_v57  ;;  %3846 = vst [vmem:[#allocation62_spill] sm:$0xff] %v2700_v30 }
 0x31e   :  { %775 = vadd.xlane.f32.xlu0 %v774_v12  ;;  %v780_v12 = vsel %vm257_vm0, %v2583_v10, 0.0  ;;  %v2704_v55 = vpop.permute.xlu1 %584  ;;  %v634_v10 = vsel %vm257_vm0, %v2629_v38, 0.0 }
 0x322   :  { %629 = vadd.xlane.f32.xlu0 %v628_v15  ;;  %v2706_v15 = vpop.xlane.xlu0 %1211  ;;  %v2709_v28 = vpop.permute.xlu1 %600 }
 0x323   :  { %3847 = vst [vmem:[#allocation63_spill] sm:$0xff] %v2706_v15 }
 0x326   :  { %653 = vadd.xlane.f32.xlu0 %v652_v29  ;;  %v759_v29 = vsel %vm257_vm0, %v709_v26, 0.0  ;;  %v2712_v57 = vpop.xlane.xlu0 %1235  ;;  %v658_v26 = vsel %vm257_vm0, %v2636_v50, 0.0 }
 0x327   :  { %3848 = vst [vmem:[#allocation64_spill] sm:$0xff] %v2712_v57 }
 0x32a   :  { %757 = vadd.xlane.f32.xlu0 %v756_v8  ;;  %v2715_v8 = vpop.xlane.xlu1 %274 }
 0x32b   :  { %3849 = vst [vmem:[#allocation65_spill] sm:$0xff] %v2715_v8 }
 0x32e   :  { %781 = vadd.xlane.f32.xlu0 %v780_v12  ;;  %v587_v12 = vpop.permute.xlu0 %586  ;;  %v2724_v57 = vpop.xlane.xlu1 %298 }
 0x32f   :  { %3851 = vst [vmem:[#allocation67_spill] sm:$0xff] %v2724_v57  ;;  %v625_v57 = vsel %vm257_vm0, %v2531_v40, 0.0  ;;  %v777_v40 = vsel %vm257_vm0, %v2551_v3, 0.0  ;;  %v661_v3 = vsel %vm257_vm0, %v2709_v28, 0.0 }
 0x332   :  { %632 = vadd.xlane.f32.xlu0 %v631_v43  ;;  %v2720_v43 = vpop.f32.mrf.mxu0  ;;  %v603_v38 = vpop.permute.xlu0 %602 }
 0x333   :  { %3850 = vst [vmem:[#allocation66_spill] sm:$0xff] %v2720_v43  ;;  %v1139_v11 = vsel %vm257_vm0, %v2720_v43, 0.0  ;;  %v713_v50 = vpop.permute.xlu1 %712 }
 0x336   :  { %760 = vadd.xlane.f32.xlu0 %v759_v29  ;;  %v2728_v29 = vpop.f32.mrf.mxu1 }
 0x337   :  { %3852 = vst [vmem:[#allocation68_spill] sm:$0xff] %v2728_v29  ;;  %v1163_v17 = vsel %vm257_vm0, %v2728_v29, 0.0  ;;  %v729_v30 = vpop.permute.xlu1 %728 }
 0x338   :  { %360 = vadd.xlane.f32.xlu1 %v359_v46  ;;  %v762_v46 = vsel %vm257_vm0, %v711_v52, 0.0  ;;  %v2744_v52 = vmul.f32 %v2728_v29, %v2728_v29 }
 0x33a   :  { %635 = vadd.xlane.f32.xlu0 %v634_v10  ;;  %v2735_v10 = vmul.f32 %v2720_v43, %v2720_v43 }
 0x33c   :  { %384 = vadd.xlane.f32.xlu1 %v383_v62  ;;  %v786_v62 = vsel %vm257_vm0, %v727_v34, 0.0  ;;  %v1243_v34 = vsel %vm257_vm0, %v2744_v52, 0.0 }
 0x33e   :  { %659 = vadd.xlane.f32.xlu0 %v658_v26 }
 0x340   :  { %1140 = vadd.xlane.f32.xlu1 %v1139_v11  ;;  %v1219_v11 = vsel %vm257_vm0, %v2735_v10, 0.0 }
 0x342   :  { %763 = vadd.xlane.f32.xlu0 %v762_v46  ;;  %v640_v46 = vsel %vm257_vm0, %v587_v12, 0.0 }
 0x344   :  { %1164 = vadd.xlane.f32.xlu1 %v1163_v17  ;;  %v664_v17 = vsel %vm257_vm0, %v603_v38, 0.0 }
 0x346   :  { %v2738_v26 = vpop.xlane.xlu0 %277  ;;  %787 = vadd.xlane.f32.xlu0 %v786_v62  ;;  %v2752_v62 = vpop.xlane.xlu1 %354 }
 0x348   :  { %1220 = vadd.xlane.f32.xlu1 %v1219_v11 }
 0x34a   :  { %v2747_v15 = vpop.xlane.xlu0 %301  ;;  %641 = vadd.xlane.f32.xlu0 %v640_v46  ;;  %v649_v46 = vsel %vm257_vm0, %v2535_v51, 0.0  ;;  %v2759_v8 = vpop.xlane.xlu1 %378 }
 0x34c   :  { %1244 = vadd.xlane.f32.xlu1 %v1243_v34  ;;  %v753_v34 = vsel %vm257_vm0, %v2544_v58, 0.0  ;;  %v637_v58 = vsel %vm257_vm0, %v2704_v55, 0.0 }
 0x34e   :  { %v715_v1 = vpop.permute.xlu0 %714  ;;  %665 = vadd.xlane.f32.xlu0 %v664_v17  ;;  %v2764_v17 = vpop.xlane.xlu1 %1134 }
 0x34f   :  { %v768_v12 = vsel %vm257_vm0, %v715_v1, 0.0  ;;  %3853 = vst [vmem:[#allocation69_spill] sm:$0xff] %v2764_v17  ;;  %v655_v1 = vsel %vm257_vm0, %v2627_v54, 0.0  ;;  %v765_v54 = vsel %vm257_vm0, %v713_v50, 0.0 }
 0x350   :  { %626 = vadd.xlane.f32.xlu1 %v625_v57  ;;  %v783_v57 = vsel %vm257_vm0, %v2661_v13, 0.0 }
 0x352   :  { %v731_v11 = vpop.permute.xlu0 %730  ;;  %769 = vadd.xlane.f32.xlu0 %v768_v12  ;;  %v2770_v51 = vpop.xlane.xlu1 %1158 }
 0x353   :  { %v792_v38 = vsel %vm257_vm0, %v731_v11, 0.0  ;;  %3854 = vst [vmem:[#allocation70_spill] sm:$0xff] %v2770_v51 }
 0x354   :  { %650 = vadd.xlane.f32.xlu1 %v649_v46  ;;  %v789_v46 = vsel %vm257_vm0, %v729_v30, 0.0 }
 0x356   :  { %793 = vadd.xlane.f32.xlu0 %v792_v38  ;;  %v2774_v12 = vpop.xlane.xlu1 %1214 }
 0x357   :  { %3855 = vst [vmem:[#allocation71_spill] sm:$0xff] %v2774_v12 }
 0x358   :  { %754 = vadd.xlane.f32.xlu1 %v753_v34 }
 0x35a   :  { %v2780_v11 = vpop.xlane.xlu1 %1238 }
 0x35b   :  { %3856 = vst [vmem:[#allocation72_spill] sm:$0xff] %v2780_v11 }
 0x35c   :  { %778 = vadd.xlane.f32.xlu1 %v777_v40 }
 0x35e   :  { %v589_v13 = vpop.permute.xlu1 %588 }
 0x35f   :  { %v643_v55 = vsel %vm257_vm0, %v589_v13, 0.0 }
 0x360   :  { %656 = vadd.xlane.f32.xlu1 %v655_v1 }
 0x362   :  { %v605_v28 = vpop.permute.xlu1 %604 }
 0x363   :  { %v667_v50 = vsel %vm257_vm0, %v605_v28, 0.0 }
 0x364   :  { %784 = vadd.xlane.f32.xlu1 %v783_v57 }
 0x368   :  { %638 = vadd.xlane.f32.xlu1 %v637_v58 }
 0x36c   :  { %1422 = vrot.lane.b32.xlu0 %v2287_v45, %s2233_s0  ;;  %662 = vadd.xlane.f32.xlu1 %v661_v3 }
 0x370   :  { %1430 = vrot.lane.b32.xlu0 %v2457_v59, %s2233_s0  ;;  %766 = vadd.xlane.f32.xlu1 %v765_v54 }
 0x374   :  { %1434 = vrot.lane.b32.xlu0 %v2589_v21, %s2233_s0  ;;  %790 = vadd.xlane.f32.xlu1 %v789_v46 }
 0x378   :  { %1438 = vrot.lane.b32.xlu0 %v2291_v49, %s2233_s0  ;;  %644 = vadd.xlane.f32.xlu1 %v643_v55 }
 0x37c   :  { %1442 = vrot.lane.b32.xlu0 %v2386_v25, %s2233_s0  ;;  %668 = vadd.xlane.f32.xlu1 %v667_v50 }
 0x380   :  { %1446 = vrot.lane.b32.xlu0 %v2461_v61, %s2233_s0 }
 0x383   :  { %v2798_v30 = vpop.xlane.xlu0 %357 }
 0x384   :  { %1450 = vrot.lane.b32.xlu0 %v2593_v63, %s2233_s0  ;;  %v2802_v38 = vpop.xlane.xlu1 %280 }
 0x387   :  { %v2804_v34 = vpop.xlane.xlu0 %381 }
 0x388   :  { %1550 = vrot.lane.b32.xlu0 %v2341_v6, %s2233_s0  ;;  %v2808_v40 = vpop.xlane.xlu1 %304 }
 0x38b   :  { %v2810_v1 = vpop.xlane.xlu0 %1137 }
 0x38c   :  { %1554 = vrot.lane.b32.xlu0 %v2405_v32, %s2233_s0  ;;  %v717_v57 = vpop.permute.xlu1 %716 }
 0x38d   :  { %v771_v58 = vsel %vm257_vm0, %v717_v57, 0.0 }
 0x38e   :  { %772 = vadd.xlane.f32.xlu1 %v771_v58 }
 0x38f   :  { %v2815_v3 = vpop.xlane.xlu0 %1161 }
 0x390   :  { %1558 = vrot.lane.b32.xlu0 %v2489_v14, %s2233_s0  ;;  %v733_v54 = vpop.permute.xlu1 %732 }
 0x391   :  { %v795_v13 = vsel %vm257_vm0, %v733_v54, 0.0 }
 0x392   :  { %796 = vadd.xlane.f32.xlu1 %v795_v13 }
 0x393   :  { %v2820_v6 = vpop.xlane.xlu0 %1217 }
 0x394   :  { %1562 = vrot.lane.b32.xlu0 %v2651_v24, %s2233_s0 }
 0x397   :  { %v2824_v46 = vpop.xlane.xlu0 %1241 }
 0x398   :  { %1566 = vrot.lane.b32.xlu0 %v2349_v9, %s2233_s0 }
 0x39b   :  { %v624_v32 = vpop.xlane.xlu0 %623 }
 0x39c   :  { %1570 = vrot.lane.b32.xlu0 %v2413_v35, %s2233_s0  ;;  %v670_v14 = vmul.f32 0.015625, %v624_v32 }
 0x39e   :  { %v814_v50 = vmul.f32 %v670_v14, %v670_v14 }
 0x39f   :  { %v648_v55 = vpop.xlane.xlu0 %647 }
 0x3a0   :  { %1574 = vrot.lane.b32.xlu0 %v2497_v19, %s2233_s0  ;;  %v678_v24 = vmul.f32 0.015625, %v648_v55 }
 0x3a2   :  { %v822_v35 = vmul.f32 %v678_v24, %v678_v24 }
 0x3a3   :  { %v752_v28 = vpop.xlane.xlu0 %751  ;;  %1424 = vrot.lane.b32.xlu1 %v2329_v2, %s2233_s0 }
 0x3a4   :  { %v798_v57 = vmul.f32 0.015625, %v752_v28  ;;  %1578 = vrot.lane.b32.xlu0 %v2659_v41, %s2233_s0 }
 0x3a6   :  { %v830_v9 = vsub.f32 %v798_v57, %v814_v50 }
 0x3a7   :  { %v776_v58 = vpop.xlane.xlu0 %775  ;;  %1426 = vrot.lane.b32.xlu1 %v2382_v23, %s2233_s0 }
 0x3a8   :  { %v846_v54 = vadd.f32 1e-05, %v830_v9  ;;  %v806_v13 = vmul.f32 0.015625, %v776_v58 }
 0x3aa   :  { %2028 = vrsqrt.f32 %v846_v54  ;;  %v838_v19 = vsub.f32 %v806_v13, %v822_v35  ;;  %v2847_v54 = vld [vmem:[%s3740_s2] ss:$0 sm:$0xff] }
 0x3ab   :  { %v630_v32 = vpop.xlane.xlu0 %629  ;;  %1428 = vrot.lane.b32.xlu1 %v2417_v37, %s2233_s0 }
 0x3ac   :  { %v854_v2 = vadd.f32 1e-05, %v838_v19  ;;  %v672_v41 = vmul.f32 0.015625, %v630_v32 }
 0x3ae   :  { %2030 = vrsqrt.f32 %v854_v2  ;;  %v816_v50 = vmul.f32 %v672_v41, %v672_v41 }
 0x3af   :  { %v654_v55 = vpop.xlane.xlu0 %653  ;;  %1432 = vrot.lane.b32.xlu1 %v2515_v31, %s2233_s0 }
 0x3b0   :  { %v680_v57 = vmul.f32 0.015625, %v654_v55 }
 0x3b2   :  { %v824_v13 = vmul.f32 %v680_v57, %v680_v57 }
 0x3b3   :  { %v758_v28 = vpop.xlane.xlu0 %757  ;;  %1436 = vrot.lane.b32.xlu1 %v2720_v43, %s2233_s0 }
 0x3b4   :  { %v800_v9 = vmul.f32 0.015625, %v758_v28 }
 0x3b6   :  { %v832_v58 = vsub.f32 %v800_v9, %v816_v50 }
 0x3b7   :  { %v2029_v35 = vpop.eup %2028  ;;  %v782_v2 = vpop.xlane.xlu0 %781  ;;  %1440 = vrot.lane.b32.xlu1 %v2335_v4, %s2233_s0 }
 0x3b8   :  { %v848_v19 = vadd.f32 1e-05, %v832_v58  ;;  %v808_v32 = vmul.f32 0.015625, %v782_v2  ;;  %v878_v31 = vmul.f32 %v2029_v35, %v2847_v54  ;;  %v2862_v58 = vld [vmem:[%s3741_s3] ss:$0 sm:$0xff] }
 0x3ba   :  { %2032 = vrsqrt.f32 %v848_v19  ;;  %v840_v43 = vsub.f32 %v808_v32, %v824_v13  ;;  %910 = vrot.lane.b32.xlu0 %v878_v31, %s2233_s0  ;;  %v974_v37 = vmul.f32 %v878_v31, %v670_v14 }
 0x3bb   :  { %v2031_v55 = vpop.eup %2030  ;;  %v2853_v28 = vpop.xlane.xlu0 %632  ;;  %1444 = vrot.lane.b32.xlu1 %v2429_v42, %s2233_s0 }
 0x3bc   :  { %v856_v50 = vadd.f32 1e-05, %v840_v43  ;;  %v886_v9 = vmul.f32 %v2031_v55, %v2847_v54  ;;  %v990_v2 = vsub.f32 %v2862_v58, %v974_v37 }
 0x3be   :  { %2034 = vrsqrt.f32 %v856_v50  ;;  %926 = vrot.lane.b32.xlu0 %v886_v9, %s2233_s0  ;;  %v982_v13 = vmul.f32 %v886_v9, %v678_v24 }
 0x3bf   :  { %v2864_v35 = vpop.xlane.xlu0 %760  ;;  %1448 = vrot.lane.b32.xlu1 %v2521_v36, %s2233_s0 }
 0x3c0   :  { %v998_v14 = vsub.f32 %v2862_v58, %v982_v13 }
 0x3c1   :  { %v2869_v43 = vpop.xlane.xlu1 %360 }
 0x3c2   :  { %1022 = vrot.lane.b32.xlu0 %v990_v2, %s2233_s0 }
 0x3c3   :  { %v636_v31 = vpop.xlane.xlu0 %635  ;;  %1452 = vrot.lane.b32.xlu1 %v2728_v29, %s2233_s0 }
 0x3c4   :  { %v2880_v37 = vmul.f32 0.015625, %v636_v31 }
 0x3c5   :  { %v2875_v19 = vpop.xlane.xlu1 %384 }
 0x3c6   :  { %1038 = vrot.lane.b32.xlu0 %v998_v14, %s2233_s0  ;;  %v818_v14 = vmul.f32 %v2880_v37, %v2880_v37 }
 0x3c7   :  { %v2033_v32 = vpop.eup %2032  ;;  %v660_v55 = vpop.xlane.xlu0 %659  ;;  %1552 = vrot.lane.b32.xlu1 %v2365_v16, %s2233_s0 }
 0x3c8   :  { %v2883_v24 = vmul.f32 %v2033_v32, %v2847_v54  ;;  %v2887_v2 = vmul.f32 0.015625, %v660_v55 }
 0x3c9   :  { %v2885_v50 = vpop.xlane.xlu1 %1140 }
 0x3ca   :  { %3857 = vst [vmem:[#allocation73_spill] sm:$0xff] %v2885_v50  ;;  %v976_v31 = vmul.f32 %v2883_v24, %v672_v41  ;;  %v826_v55 = vmul.f32 %v2887_v2, %v2887_v2 }
 0x3cb   :  { %v2035_v9 = vpop.eup %2034  ;;  %v764_v13 = vpop.xlane.xlu0 %763  ;;  %1556 = vrot.lane.b32.xlu1 %v2443_v53, %s2233_s0 }
 0x3cc   :  { %v802_v29 = vmul.f32 0.015625, %v764_v13  ;;  %v888_v16 = vmul.f32 %v2035_v9, %v2847_v54  ;;  %v992_v13 = vsub.f32 %v2862_v58, %v976_v31 }
 0x3cd   :  { %v2895_v36 = vpop.xlane.xlu1 %1164 }
 0x3ce   :  { %3858 = vst [vmem:[#allocation74_spill] sm:$0xff] %v2895_v36  ;;  %v834_v32 = vsub.f32 %v802_v29, %v818_v14  ;;  %930 = vrot.lane.b32.xlu0 %v888_v16, %s2233_s0  ;;  %v984_v11 = vmul.f32 %v888_v16, %v680_v57 }
 0x3cf   :  { %v788_v42 = vpop.xlane.xlu0 %787  ;;  %1560 = vrot.lane.b32.xlu1 %v2557_v7, %s2233_s0 }
 0x3d0   :  { %v850_v53 = vadd.f32 1e-05, %v834_v32  ;;  %v810_v4 = vmul.f32 0.015625, %v788_v42  ;;  %v1000_v36 = vsub.f32 %v2862_v58, %v984_v11 }
 0x3d1   :  { %v2903_v9 = vpop.xlane.xlu1 %1220 }
 0x3d2   :  { %3859 = vst [vmem:[#allocation75_spill] sm:$0xff] %v2903_v9  ;;  %2036 = vrsqrt.f32 %v850_v53  ;;  %v842_v41 = vsub.f32 %v810_v4, %v826_v55  ;;  %1026 = vrot.lane.b32.xlu0 %v992_v13, %s2233_s0 }
 0x3d3   :  { %v642_v29 = vpop.xlane.xlu0 %641  ;;  %1564 = vrot.lane.b32.xlu1 %v2735_v10, %s2233_s0 }
 0x3d4   :  { %v858_v14 = vadd.f32 1e-05, %v842_v41  ;;  %v2914_v7 = vmul.f32 0.015625, %v642_v29 }
 0x3d5   :  { %v2909_v51 = vpop.xlane.xlu1 %1244 }
 0x3d6   :  { %3860 = vst [vmem:[#allocation76_spill] sm:$0xff] %v2909_v51  ;;  %2038 = vrsqrt.f32 %v858_v14  ;;  %1042 = vrot.lane.b32.xlu0 %v1000_v36, %s2233_s0  ;;  %v820_v10 = vmul.f32 %v2914_v7, %v2914_v7 }
 0x3d7   :  { %v666_v42 = vpop.xlane.xlu0 %665  ;;  %1568 = vrot.lane.b32.xlu1 %v2371_v18, %s2233_s0 }
 0x3d8   :  { %v2920_v11 = vmul.f32 0.015625, %v666_v42 }
 0x3d9   :  { %v627_v4 = vpop.xlane.xlu1 %626 }
 0x3da   :  { %v2922_v31 = vmul.f32 0.015625, %v627_v4  ;;  %v828_v18 = vmul.f32 %v2920_v11, %v2920_v11 }
 0x3db   :  { %v770_v57 = vpop.xlane.xlu0 %769  ;;  %1572 = vrot.lane.b32.xlu1 %v2451_v56, %s2233_s0 }
 0x3dc   :  { %v804_v16 = vmul.f32 0.015625, %v770_v57  ;;  %v815_v29 = vmul.f32 %v2922_v31, %v2922_v31 }
 0x3dd   :  { %v651_v36 = vpop.xlane.xlu1 %650 }
 0x3de   :  { %v836_v32 = vsub.f32 %v804_v16, %v820_v10  ;;  %v2931_v42 = vmul.f32 0.015625, %v651_v36 }
 0x3df   :  { %v2037_v55 = vpop.eup %2036  ;;  %v794_v53 = vpop.xlane.xlu0 %793  ;;  %1576 = vrot.lane.b32.xlu1 %v2569_v22, %s2233_s0 }
 0x3e0   :  { %v852_v13 = vadd.f32 1e-05, %v836_v32  ;;  %v812_v56 = vmul.f32 0.015625, %v794_v53  ;;  %v882_v41 = vmul.f32 %v2037_v55, %v2847_v54  ;;  %v823_v36 = vmul.f32 %v2931_v42, %v2931_v42 }
 0x3e1   :  { %v755_v14 = vpop.xlane.xlu1 %754 }
 0x3e2   :  { %2040 = vrsqrt.f32 %v852_v13  ;;  %v844_v4 = vsub.f32 %v812_v56, %v828_v18  ;;  %v799_v57 = vmul.f32 0.015625, %v755_v14  ;;  %918 = vrot.lane.b32.xlu0 %v882_v41, %s2233_s0  ;;  %v978_v53 = vmul.f32 %v882_v41, %v2880_v37 }
 0x3e3   :  { %v2039_v10 = vpop.eup %2038  ;;  %v2934_v22 = vpop.permute.xlu0 %1422  ;;  %1580 = vrot.lane.b32.xlu1 %v2744_v52, %s2233_s0  ;;  %v2951_v41 = vmul.f32 0.015625, %v2853_v28 }
 0x3e4   :  { %v860_v16 = vadd.f32 1e-05, %v844_v4  ;;  %v831_v32 = vsub.f32 %v799_v57, %v815_v29  ;;  %v890_v55 = vmul.f32 %v2039_v10, %v2847_v54  ;;  %v994_v52 = vsub.f32 %v2862_v58, %v978_v53 }
 0x3e5   :  { %v779_v51 = vpop.xlane.xlu1 %778 }
 0x3e6   :  { %2042 = vrsqrt.f32 %v860_v16  ;;  %v847_v18 = vadd.f32 1e-05, %v831_v32  ;;  %v807_v13 = vmul.f32 0.015625, %v779_v51  ;;  %934 = vrot.lane.b32.xlu0 %v890_v55, %s2233_s0  ;;  %v986_v29 = vmul.f32 %v890_v55, %v2887_v2 }
 0x3e7   :  { %v2943_v56 = vpop.permute.xlu0 %1430  ;;  %v801_v16 = vmul.f32 0.015625, %v2864_v35  ;;  %v817_v2 = vmul.f32 %v2951_v41, %v2951_v41 }
 0x3e8   :  { %2044 = vrsqrt.f32 %v847_v18  ;;  %v839_v14 = vsub.f32 %v807_v13, %v823_v36  ;;  %v1002_v51 = vsub.f32 %v2862_v58, %v986_v29 }
 0x3e9   :  { %v657_v4 = vpop.xlane.xlu1 %656  ;;  %v833_v18 = vsub.f32 %v801_v16, %v817_v2 }
 0x3ea   :  { %v855_v57 = vadd.f32 1e-05, %v839_v14  ;;  %1030 = vrot.lane.b32.xlu0 %v994_v52, %s2233_s0  ;;  %v2960_v55 = vmul.f32 0.015625, %v657_v4 }
 0x3eb   :  { %v2948_v37 = vpop.permute.xlu0 %1434  ;;  %v849_v9 = vadd.f32 1e-05, %v833_v18 }
 0x3ec   :  { %2046 = vrsqrt.f32 %v855_v57  ;;  %v825_v35 = vmul.f32 %v2960_v55, %v2960_v55 }
 0x3ed   :  { %v785_v10 = vpop.xlane.xlu1 %784  ;;  %2048 = vrsqrt.f32 %v849_v9 }
 0x3ee   :  { %1046 = vrot.lane.b32.xlu0 %v1002_v51, %s2233_s0  ;;  %v809_v13 = vmul.f32 0.015625, %v785_v10 }
 0x3ef   :  { %v2041_v32 = vpop.eup %2040  ;;  %v2956_v53 = vpop.permute.xlu0 %1438 }
 0x3f0   :  { %v884_v36 = vmul.f32 %v2041_v32, %v2847_v54  ;;  %v841_v50 = vsub.f32 %v809_v13, %v825_v35 }
 0x3f1   :  { %v639_v28 = vpop.xlane.xlu1 %638 }
 0x3f2   :  { %922 = vrot.lane.b32.xlu0 %v884_v36, %s2233_s0  ;;  %v980_v57 = vmul.f32 %v884_v36, %v2914_v7  ;;  %v857_v7 = vadd.f32 1e-05, %v841_v50  ;;  %v2981_v13 = vmul.f32 0.015625, %v639_v28 }
 0x3f3   :  { %v2043_v14 = vpop.eup %2042  ;;  %v2964_v52 = vpop.permute.xlu0 %1442 }
 0x3f4   :  { %v892_v29 = vmul.f32 %v2043_v14, %v2847_v54  ;;  %v996_v32 = vsub.f32 %v2862_v58, %v980_v57  ;;  %2050 = vrsqrt.f32 %v857_v7 }
 0x3f5   :  { %v2045_v51 = vpop.eup %2044  ;;  %v663_v4 = vpop.xlane.xlu1 %662 }
 0x3f6   :  { %938 = vrot.lane.b32.xlu0 %v892_v29, %s2233_s0  ;;  %v879_v10 = vmul.f32 %v2045_v51, %v2847_v54  ;;  %v988_v2 = vmul.f32 %v892_v29, %v2920_v11  ;;  %v2991_v29 = vmul.f32 0.015625, %v663_v4 }
 0x3f7   :  { %v2972_v16 = vpop.permute.xlu0 %1446 }
 0x3f8   :  { %912 = vrot.lane.b32.xlu1 %v879_v10, %s2233_s0  ;;  %v1004_v35 = vsub.f32 %v2862_v58, %v988_v2  ;;  %v975_v11 = vmul.f32 %v879_v10, %v2922_v31  ;;  %v827_v31 = vmul.f32 %v2991_v29, %v2991_v29 }
 0x3f9   :  { %v2047_v63 = vpop.eup %2046  ;;  %v767_v14 = vpop.xlane.xlu1 %766 }
 0x3fa   :  { %1034 = vrot.lane.b32.xlu0 %v996_v32, %s2233_s0  ;;  %v887_v36 = vmul.f32 %v2047_v63, %v2847_v54  ;;  %v803_v57 = vmul.f32 0.015625, %v767_v14  ;;  %v819_v63 = vmul.f32 %v2981_v13, %v2981_v13  ;;  %v991_v32 = vsub.f32 %v2862_v58, %v975_v11 }
 0x3fb   :  { %v2979_v18 = vpop.permute.xlu0 %1450  ;;  %v3008_v11 = vmul.f32 0.015625, %v2499_v20 }
 0x3fc   :  { %928 = vrot.lane.b32.xlu1 %v887_v36, %s2233_s0  ;;  %v835_v28 = vsub.f32 %v803_v57, %v819_v63  ;;  %v983_v2 = vmul.f32 %v887_v36, %v2931_v42 }
 0x3fd   :  { %v791_v9 = vpop.xlane.xlu1 %790 }
 0x3fe   :  { %1050 = vrot.lane.b32.xlu0 %v1004_v35, %s2233_s0  ;;  %v811_v51 = vmul.f32 0.015625, %v791_v9  ;;  %v851_v14 = vadd.f32 1e-05, %v835_v28  ;;  %v999_v4 = vsub.f32 %v2862_v58, %v983_v2  ;;  %v2049_v35 = vpop.eup %2048  ;;  %v386_v9 = vmul.f32 0.015625, %v2517_v33 }
 0x3ff   :  { %v2987_v50 = vpop.permute.xlu0 %1550  ;;  %v881_v42 = vmul.f32 %v2049_v35, %v2847_v54  ;;  %v3017_v2 = vmul.f32 0.015625, %v2505_v27 }
 0x400   :  { %914 = vrot.lane.b32.xlu1 %v2883_v24, %s2233_s0  ;;  %v843_v7 = vsub.f32 %v811_v51, %v827_v31  ;;  %2052 = vrsqrt.f32 %v851_v14  ;;  %v394_v14 = vmul.f32 0.015625, %v2527_v39 }
 0x401   :  { %v2051_v36 = vpop.eup %2050  ;;  %v645_v63 = vpop.xlane.xlu1 %644  ;;  %v977_v51 = vmul.f32 %v881_v42, %v2951_v41  ;;  %v410_v41 = vmul.f32 %v3017_v2, %v3017_v2 }
 0x402   :  { %v859_v24 = vadd.f32 1e-05, %v843_v7  ;;  %v889_v28 = vmul.f32 %v2051_v36, %v2847_v54  ;;  %v3027_v35 = vmul.f32 0.015625, %v645_v63 }
 0x403   :  { %v2999_v10 = vpop.permute.xlu0 %1554  ;;  %v993_v33 = vsub.f32 %v2862_v58, %v977_v51 }
 0x404   :  { %1024 = vrot.lane.b32.xlu1 %v991_v32, %s2233_s0  ;;  %2054 = vrsqrt.f32 %v859_v24  ;;  %v402_v32 = vmul.f32 %v3008_v11, %v3008_v11  ;;  %v985_v7 = vmul.f32 %v889_v28, %v2960_v55  ;;  %v426_v24 = vsub.f32 %v394_v14, %v410_v41 }
 0x405   :  { %v821_v51 = vmul.f32 %v3027_v35, %v3027_v35 }
 0x406   :  { %v418_v20 = vsub.f32 %v386_v9, %v402_v32  ;;  %v1001_v36 = vsub.f32 %v2862_v58, %v985_v7  ;;  %v442_v63 = vadd.f32 1e-05, %v426_v24 }
 0x407   :  { %v3004_v57 = vpop.permute.xlu0 %1558 }
 0x408   :  { %1040 = vrot.lane.b32.xlu1 %v999_v4, %s2233_s0  ;;  %v669_v4 = vpop.xlane.xlu1 %668  ;;  %v434_v27 = vadd.f32 1e-05, %v418_v20 }
 0x409   :  { %v3035_v55 = vmul.f32 0.015625, %v669_v4  ;;  %v1470_v4 = vsel %vm257_vm0, %v2934_v22, 0.0 }
 0x40a   :  { %2056 = vrsqrt.f32 %v434_v27 }
 0x40b   :  { %v3019_v31 = vpop.permute.xlu0 %1562  ;;  %v829_v7 = vmul.f32 %v3035_v55, %v3035_v55  ;;  %2058 = vrsqrt.f32 %v442_v63 }
 0x40c   :  { %916 = vrot.lane.b32.xlu1 %v881_v42, %s2233_s0 }
 0x40d   :  { %v2053_v9 = vpop.eup %2052 }
 0x40e   :  { %v883_v20 = vmul.f32 %v2053_v9, %v2847_v54  ;;  %v3049_v9 = vmul.f32 0.015625, %v2579_v5 }
 0x40f   :  { %v3030_v42 = vpop.permute.xlu0 %1566 }
 0x410   :  { %932 = vrot.lane.b32.xlu1 %v889_v28, %s2233_s0  ;;  %v412_v22 = vmul.f32 %v3049_v9, %v3049_v9 }
 0x411   :  { %v2055_v14 = vpop.eup %2054 }
 0x412   :  { %v891_v24 = vmul.f32 %v2055_v14, %v2847_v54 }
 0x413   :  { %v3041_v41 = vpop.permute.xlu0 %1570 }
 0x414   :  { %1028 = vrot.lane.b32.xlu1 %v993_v33, %s2233_s0 }
 0x417   :  { %v773_v39 = vpop.xlane.xlu1 %772 }
 0x418   :  { %v805_v28 = vmul.f32 0.015625, %v773_v39  ;;  %1044 = vrot.lane.b32.xlu1 %v1001_v36, %s2233_s0  ;;  %v979_v36 = vmul.f32 %v883_v20, %v2981_v13 }
 0x41a   :  { %v837_v32 = vsub.f32 %v805_v28, %v821_v51  ;;  %v396_v28 = vmul.f32 0.015625, %v2599_v0 }
 0x41b   :  { %v797_v33 = vpop.xlane.xlu1 %796 }
 0x41c   :  { %v853_v23 = vadd.f32 1e-05, %v837_v32  ;;  %v813_v12 = vmul.f32 0.015625, %v797_v33  ;;  %920 = vrot.lane.b32.xlu1 %v883_v20, %s2233_s0  ;;  %v3055_v32 = vpop.permute.xlu0 %1574  ;;  %v428_v63 = vsub.f32 %v396_v28, %v412_v22  ;;  %v2057_v20 = vpop.eup %2056  ;;  %v1482_v28 = vsel %vm257_vm0, %v2943_v56, 0.0 }
 0x41d   :  { %1471 = vadd.xlane.f32.xlu0 %v1470_v4  ;;  %v472_v4 = vmul.f32 %v2057_v20, %v2847_v54  ;;  %v1488_v20 = vsel %vm257_vm0, %v2948_v37, 0.0 }
 0x41e   :  { %2060 = vrsqrt.f32 %v853_v23  ;;  %v845_v27 = vsub.f32 %v813_v12, %v829_v7  ;;  %v995_v23 = vsub.f32 %v2862_v58, %v979_v36  ;;  %v987_v12 = vmul.f32 %v891_v24, %v2991_v29 }
 0x41f   :  { %v3051_v39 = vpop.permute.xlu1 %1424  ;;  %v444_v7 = vadd.f32 1e-05, %v428_v63 }
 0x420   :  { %v861_v51 = vadd.f32 1e-05, %v845_v27  ;;  %936 = vrot.lane.b32.xlu1 %v891_v24, %s2233_s0  ;;  %v1003_v0 = vsub.f32 %v2862_v58, %v987_v12  ;;  %v3064_v33 = vpop.permute.xlu0 %1578  ;;  %v2059_v27 = vpop.eup %2058  ;;  %v504_v12 = vmul.f32 %v472_v4, %v3008_v11 }
 0x421   :  { %v480_v22 = vmul.f32 %v2059_v27, %v2847_v54 }
 0x422   :  { %2062 = vrsqrt.f32 %v861_v51 }
 0x423   :  { %v1427_v13 = vpop.permute.xlu1 %1426  ;;  %2064 = vrsqrt.f32 %v444_v7  ;;  %v512_v11 = vmul.f32 %v480_v22, %v3017_v2  ;;  %v3861_v7 = vld [vmem:[#allocation11_spill] sm:$0xff]  ;;  %v390_v2 = vmul.f32 0.015625, %v2679_v47 }
 0x424   :  { %1032 = vrot.lane.b32.xlu1 %v995_v23, %s2233_s0  ;;  %v1476_v5 = vsel %vm257_vm0, %v1427_v13, 0.0  ;;  %v488_v37 = vmul.f32 %v472_v4, %v3861_v7 }
 0x425   :  { %1477 = vadd.xlane.f32.xlu0 %v1476_v5 }
 0x427   :  { %v1429_v14 = vpop.permute.xlu1 %1428 }
 0x428   :  { %1048 = vrot.lane.b32.xlu1 %v1003_v0, %s2233_s0  ;;  %v1479_v29 = vsel %vm257_vm0, %v1429_v14, 0.0  ;;  %v526_v14 = vsub.f32 %v2862_v58, %v504_v12 }
 0x429   :  { %1480 = vadd.xlane.f32.xlu0 %v1479_v29  ;;  %v3087_v29 = vmul.f32 0.015625, %v2645_v48  ;;  %v534_v48 = vsub.f32 %v2862_v58, %v512_v11 }
 0x42b   :  { %v2061_v24 = vpop.eup %2060  ;;  %v3069_v36 = vpop.permute.xlu1 %1432  ;;  %v406_v4 = vmul.f32 %v3087_v29, %v3087_v29 }
 0x42c   :  { %v911_v51 = vpop.permute.xlu0 %910  ;;  %v885_v23 = vmul.f32 %v2061_v24, %v2847_v54 }
 0x42d   :  { %1483 = vadd.xlane.f32.xlu0 %v1482_v28  ;;  %v958_v27 = vmul.f32 %v911_v51, %v3861_v7  ;;  %v3862_v51 = vld [vmem:[#allocation12_spill] sm:$0xff] }
 0x42e   :  { %924 = vrot.lane.b32.xlu1 %v885_v23, %s2233_s0  ;;  %v981_v56 = vmul.f32 %v885_v23, %v3027_v35  ;;  %v1494_v35 = vsel %vm257_vm0, %v2956_v53, 0.0  ;;  %v496_v17 = vmul.f32 %v480_v22, %v3862_v51  ;;  %v3863_v7 = vld [vmem:[#allocation56_spill] sm:$0xff]  ;;  %v422_v22 = vsub.f32 %v390_v2, %v406_v4 }
 0x42f   :  { %v2063_v13 = vpop.eup %2062  ;;  %v3077_v5 = vpop.permute.xlu1 %1436  ;;  %v3104_v53 = vmul.f32 0.015625, %v3863_v7  ;;  %v3129_v7 = vmul.f32 0.015625, %v2738_v26  ;;  %v3864_v26 = vld [vmem:[#allocation18_spill] sm:$0xff] }
 0x430   :  { %v927_v63 = vpop.permute.xlu0 %926  ;;  %v893_v0 = vmul.f32 %v2063_v13, %v2847_v54  ;;  %v997_v23 = vsub.f32 %v2862_v58, %v981_v56  ;;  %v542_v13 = vadd.f32 %v526_v14, %v488_v37  ;;  %v1500_v14 = vsel %vm257_vm0, %v2964_v52, 0.0 }
 0x431   :  { %1489 = vadd.xlane.f32.xlu0 %v1488_v20  ;;  %v966_v56 = vmul.f32 %v927_v63, %v3862_v51  ;;  %v550_v37 = vadd.f32 %v534_v48, %v496_v17  ;;  %v414_v63 = vmul.f32 %v3104_v53, %v3104_v53  ;;  %v1506_v52 = vsel %vm257_vm0, %v2972_v16, 0.0 }
 0x432   :  { %940 = vrot.lane.b32.xlu1 %v893_v0, %s2233_s0  ;;  %v989_v12 = vmul.f32 %v893_v0, %v3035_v55  ;;  %v1512_v48 = vsel %vm257_vm0, %v2979_v18, 0.0 }
 0x433   :  { %v3090_v24 = vpop.permute.xlu1 %1440 }
 0x434   :  { %v1023_v28 = vpop.permute.xlu0 %1022  ;;  %v1005_v11 = vsub.f32 %v2862_v58, %v989_v12  ;;  %v438_v12 = vadd.f32 1e-05, %v422_v22 }
 0x435   :  { %v1070_v20 = vadd.f32 %v1023_v28, %v958_v27  ;;  %1495 = vadd.xlane.f32.xlu0 %v1494_v35  ;;  %v398_v27 = vmul.f32 0.015625, %v2687_v60  ;;  %v2065_v35 = vpop.eup %2064 }
 0x436   :  { %1036 = vrot.lane.b32.xlu1 %v997_v23, %s2233_s0  ;;  %v482_v60 = vmul.f32 %v2065_v35, %v2847_v54  ;;  %2066 = vrsqrt.f32 %v438_v12 }
 0x437   :  { %v1086_v55 = vsel %vm257_vm0, %v542_v13, %v1070_v20  ;;  %v3108_v47 = vpop.permute.xlu1 %1444  ;;  %v430_v2 = vsub.f32 %v398_v27, %v414_v63 }
 0x438   :  { %1102 = vst [vmem:[#allocation7] sm:$0xff] %v1086_v55  ;;  %v1039_v0 = vpop.permute.xlu0 %1038  ;;  %v514_v4 = vmul.f32 %v482_v60, %v3049_v9  ;;  %v1598_v55 = vsel %vm257_vm0, %v2987_v50, 0.0  ;;  %v3142_v9 = vmul.f32 0.015625, %v2747_v15  ;;  %v498_v27 = vmul.f32 %v482_v60, %v3864_v26  ;;  %v3866_v15 = vld [vmem:[#allocation46_spill] sm:$0xff] }
 0x439   :  { %v1078_v28 = vadd.f32 %v1039_v0, %v966_v56  ;;  %1501 = vadd.xlane.f32.xlu0 %v1500_v14  ;;  %v446_v51 = vadd.f32 1e-05, %v430_v2  ;;  %v392_v0 = vmul.f32 0.015625, %v2798_v30  ;;  %v408_v14 = vmul.f32 %v3129_v7, %v3129_v7 }
 0x43a   :  { %1052 = vrot.lane.b32.xlu1 %v1005_v11, %s2233_s0  ;;  %v536_v18 = vsub.f32 %v2862_v58, %v514_v4  ;;  %v1604_v50 = vsel %vm257_vm0, %v2999_v10, 0.0  ;;  %v3155_v12 = vmul.f32 0.015625, %v3866_v15  ;;  %v416_v2 = vmul.f32 %v3142_v9, %v3142_v9  ;;  %v3867_v10 = vld [vmem:[#allocation42_spill] sm:$0xff] }
 0x43b   :  { %v1094_v23 = vsel %vm257_vm0, %v550_v37, %v1078_v28  ;;  %v3118_v13 = vpop.permute.xlu1 %1448  ;;  %2068 = vrsqrt.f32 %v446_v51  ;;  %v424_v30 = vsub.f32 %v392_v0, %v408_v14  ;;  %v400_v28 = vmul.f32 0.015625, %v2804_v34 }
 0x43c   :  { %1110 = vst [vmem:[#allocation7 + $0x80] sm:$0xff] %v1094_v23  ;;  %v552_v35 = vadd.f32 %v536_v18, %v498_v27  ;;  %v3865_v23 = vld [vmem:[#allocation35_spill] sm:$0xff]  ;;  %v1610_v34 = vsel %vm257_vm0, %v3004_v57, 0.0  ;;  %v404_v18 = vmul.f32 %v3155_v12, %v3155_v12  ;;  %v3869_v27 = vld [vmem:[#allocation38_spill] sm:$0xff]  ;;  %v1616_v57 = vsel %vm257_vm0, %v3019_v31, 0.0 }
 0x43d   :  { %1507 = vadd.xlane.f32.xlu0 %v1506_v52  ;;  %v3152_v52 = vmul.f32 0.015625, %v3865_v23  ;;  %v440_v51 = vadd.f32 1e-05, %v424_v30  ;;  %v432_v4 = vsub.f32 %v400_v28, %v416_v2 }
 0x43f   :  { %v3123_v17 = vpop.permute.xlu1 %1452  ;;  %v403_v0 = vmul.f32 %v3152_v52, %v3152_v52  ;;  %2070 = vrsqrt.f32 %v440_v51  ;;  %v448_v30 = vadd.f32 1e-05, %v432_v4 }
 0x440   :  { %v931_v20 = vpop.permute.xlu0 %930 }
 0x441   :  { %1513 = vadd.xlane.f32.xlu0 %v1512_v48  ;;  %v968_v11 = vmul.f32 %v931_v20, %v3864_v26  ;;  %v388_v48 = vmul.f32 0.015625, %v3867_v10  ;;  %v3868_v26 = vld [vmem:[#allocation34_spill] sm:$0xff]  ;;  %2072 = vrsqrt.f32 %v448_v30 }
 0x442   :  { %v3872_v30 = vld [vmem:[#allocation54_spill] sm:$0xff] }
 0x443   :  { %v3131_v16 = vpop.permute.xlu1 %1552 }
 0x444   :  { %v3133_v56 = vpop.permute.xlu0 %1026 }
 0x445   :  { %1599 = vadd.xlane.f32.xlu0 %v1598_v55  ;;  %v2067_v55 = vpop.eup %2066 }
 0x446   :  { %v476_v28 = vmul.f32 %v2067_v55, %v2847_v54 }
 0x447   :  { %v3145_v22 = vpop.permute.xlu1 %1556 }
 0x448   :  { %v1043_v37 = vpop.permute.xlu0 %1042  ;;  %v508_v31 = vmul.f32 %v476_v28, %v3087_v29 }
 0x449   :  { %v1080_v63 = vadd.f32 %v1043_v37, %v968_v11  ;;  %1605 = vadd.xlane.f32.xlu0 %v1604_v50  ;;  %v3172_v11 = vmul.f32 0.015625, %v3868_v26  ;;  %v387_v37 = vmul.f32 0.015625, %v3869_v27  ;;  %v420_v50 = vsub.f32 %v388_v48, %v404_v18 }
 0x44a   :  { %v1622_v48 = vsel %vm257_vm0, %v3030_v42, 0.0  ;;  %v1628_v18 = vsel %vm257_vm0, %v3041_v41, 0.0  ;;  %v530_v26 = vsub.f32 %v2862_v58, %v508_v31 }
 0x44b   :  { %v1096_v60 = vsel %vm257_vm0, %v552_v35, %v1080_v63  ;;  %v3160_v20 = vpop.permute.xlu1 %1560  ;;  %v2069_v35 = vpop.eup %2068  ;;  %v3870_v63 = vld [vmem:[#allocation39_spill] sm:$0xff]  ;;  %v419_v15 = vsub.f32 %v387_v37, %v403_v0  ;;  %v411_v2 = vmul.f32 %v3172_v11, %v3172_v11 }
 0x44c   :  { %1112 = vst [vmem:[#allocation7 + $0xa0] sm:$0xff] %v1096_v60  ;;  %v395_v23 = vmul.f32 0.015625, %v3870_v63  ;;  %v436_v60 = vadd.f32 1e-05, %v420_v50  ;;  %v484_v51 = vmul.f32 %v2069_v35, %v2847_v54  ;;  %v3871_v50 = vld [vmem:[#allocation23_spill] sm:$0xff]  ;;  %v3196_v35 = vmul.f32 0.015625, %v3872_v30 }
 0x44d   :  { %1611 = vadd.xlane.f32.xlu0 %v1610_v34  ;;  %v435_v55 = vadd.f32 1e-05, %v419_v15  ;;  %v1634_v63 = vsel %vm257_vm0, %v3055_v32, 0.0  ;;  %v397_v30 = vmul.f32 0.015625, %v2677_v44 }
 0x44e   :  { %v427_v4 = vsub.f32 %v395_v23, %v411_v2  ;;  %2074 = vrsqrt.f32 %v436_v60  ;;  %v516_v27 = vmul.f32 %v484_v51, %v3104_v53  ;;  %v1473_v53 = vsel %vm257_vm0, %v3051_v39, 0.0  ;;  %v2071_v60 = vpop.eup %2070 }
 0x44f   :  { %v3169_v14 = vpop.permute.xlu1 %1564  ;;  %2076 = vrsqrt.f32 %v435_v55  ;;  %v405_v55 = vmul.f32 %v3196_v35, %v3196_v35  ;;  %v1640_v39 = vsel %vm257_vm0, %v3064_v33, 0.0 }
 0x450   :  { %v443_v37 = vadd.f32 1e-05, %v427_v4  ;;  %v538_v2 = vsub.f32 %v2862_v58, %v516_v27 }
 0x451   :  { %1617 = vadd.xlane.f32.xlu0 %v1616_v57  ;;  %v492_v57 = vmul.f32 %v476_v28, %v3871_v50 }
 0x452   :  { %2078 = vrsqrt.f32 %v443_v37 }
 0x453   :  { %v3181_v10 = vpop.permute.xlu1 %1568  ;;  %v546_v23 = vadd.f32 %v530_v26, %v492_v57  ;;  %v2073_v57 = vpop.eup %2072 }
 0x454   :  { %v919_v34 = vpop.permute.xlu0 %918 }
 0x455   :  { %1623 = vadd.xlane.f32.xlu0 %v1622_v48  ;;  %v962_v29 = vmul.f32 %v919_v34, %v3871_v50  ;;  %v3873_v34 = vld [vmem:[#allocation57_spill] sm:$0xff] }
 0x456   :  { %v389_v28 = vmul.f32 0.015625, %v3873_v34  ;;  %v3874_v48 = vld [vmem:[#allocation25_spill] sm:$0xff] }
 0x457   :  { %v3191_v42 = vpop.permute.xlu1 %1572  ;;  %v500_v32 = vmul.f32 %v484_v51, %v3874_v48  ;;  %v478_v51 = vmul.f32 %v2071_v60, %v2847_v54 }
 0x458   :  { %v935_v0 = vpop.permute.xlu0 %934 }
 0x459   :  { %1629 = vadd.xlane.f32.xlu0 %v1628_v18  ;;  %v970_v31 = vmul.f32 %v935_v0, %v3874_v48  ;;  %v3875_v18 = vld [vmem:[#allocation55_spill] sm:$0xff]  ;;  %v554_v50 = vadd.f32 %v538_v2, %v500_v32  ;;  %v1485_v0 = vsel %vm257_vm0, %v3069_v36, 0.0  ;;  %v510_v36 = vmul.f32 %v478_v51, %v3129_v7 }
 0x45a   :  { %v3210_v26 = vmul.f32 0.015625, %v3875_v18  ;;  %v486_v2 = vmul.f32 %v2073_v57, %v2847_v54 }
 0x45b   :  { %v3214_v27 = vpop.permute.xlu1 %1576  ;;  %v532_v32 = vsub.f32 %v2862_v58, %v510_v36  ;;  %v3878_v36 = vld [vmem:[#allocation31_spill] sm:$0xff] }
 0x45c   :  { %v1031_v41 = vpop.permute.xlu0 %1030  ;;  %v413_v33 = vmul.f32 %v3210_v26, %v3210_v26 }
 0x45d   :  { %v1074_v15 = vadd.f32 %v1031_v41, %v962_v29  ;;  %1635 = vadd.xlane.f32.xlu0 %v1634_v63  ;;  %v421_v63 = vsub.f32 %v389_v28, %v405_v55 }
 0x45e   :  { %1474 = vadd.xlane.f32.xlu1 %v1473_v53  ;;  %v1491_v53 = vsel %vm257_vm0, %v3077_v5, 0.0  ;;  %v429_v60 = vsub.f32 %v397_v30, %v413_v33  ;;  %v518_v5 = vmul.f32 %v486_v2, %v3142_v9  ;;  %v1503_v9 = vsel %vm257_vm0, %v3108_v47, 0.0 }
 0x45f   :  { %v1090_v4 = vsel %vm257_vm0, %v546_v23, %v1074_v15  ;;  %v2075_v15 = vpop.eup %2074  ;;  %v3227_v34 = vpop.permute.xlu1 %1580  ;;  %v437_v28 = vadd.f32 1e-05, %v421_v63 }
 0x460   :  { %1106 = vst [vmem:[#allocation7 + $0x40] sm:$0xff] %v1090_v4  ;;  %v1047_v37 = vpop.permute.xlu0 %1046  ;;  %v2077_v44 = vpop.eup %2076  ;;  %v1497_v4 = vsel %vm257_vm0, %v3090_v24, 0.0  ;;  %v445_v55 = vadd.f32 1e-05, %v429_v60  ;;  %v540_v33 = vsub.f32 %v2862_v58, %v518_v5 }
 0x461   :  { %v1082_v29 = vadd.f32 %v1047_v37, %v970_v31  ;;  %1641 = vadd.xlane.f32.xlu0 %v1640_v39  ;;  %v474_v31 = vmul.f32 %v2075_v15, %v2847_v54  ;;  %v473_v7 = vmul.f32 %v2077_v44, %v2847_v54  ;;  %v2079_v39 = vpop.eup %2078  ;;  %2080 = vrsqrt.f32 %v437_v28  ;;  %v3876_v37 = vld [vmem:[#allocation29_spill] sm:$0xff] }
 0x462   :  { %1486 = vadd.xlane.f32.xlu1 %v1485_v0  ;;  %v3877_v0 = vld [vmem:[#allocation65_spill] sm:$0xff]  ;;  %2082 = vrsqrt.f32 %v445_v55  ;;  %v502_v44 = vmul.f32 %v486_v2, %v3878_v36 }
 0x463   :  { %v1098_v41 = vsel %vm257_vm0, %v554_v50, %v1082_v29  ;;  %v494_v29 = vmul.f32 %v478_v51, %v3876_v37  ;;  %v3238_v57 = vmul.f32 0.015625, %v3877_v0  ;;  %v506_v24 = vmul.f32 %v474_v31, %v3155_v12 }
 0x464   :  { %1114 = vst [vmem:[#allocation7 + $0xc0] sm:$0xff] %v1098_v41  ;;  %v923_v23 = vpop.permute.xlu0 %922  ;;  %v505_v15 = vmul.f32 %v473_v7, %v3152_v52  ;;  %v481_v51 = vmul.f32 %v2079_v39, %v2847_v54  ;;  %v556_v5 = vadd.f32 %v540_v33, %v502_v44  ;;  %v3880_v39 = vld [vmem:[#allocation17_spill] sm:$0xff]  ;;  %v399_v0 = vmul.f32 0.015625, %v2759_v8 }
 0x465   :  { %v964_v50 = vmul.f32 %v923_v23, %v3876_v37  ;;  %v548_v63 = vadd.f32 %v532_v32, %v494_v29  ;;  %v407_v47 = vmul.f32 %v3238_v57, %v3238_v57  ;;  %v528_v52 = vsub.f32 %v2862_v58, %v506_v24 }
 0x466   :  { %1492 = vadd.xlane.f32.xlu1 %v1491_v53  ;;  %v391_v53 = vmul.f32 0.015625, %v2752_v62  ;;  %v1509_v62 = vsel %vm257_vm0, %v3118_v13, 0.0  ;;  %v490_v2 = vmul.f32 %v474_v31, %v3880_v39 }
 0x468   :  { %v939_v48 = vpop.permute.xlu0 %938  ;;  %v423_v29 = vsub.f32 %v391_v53, %v407_v47  ;;  %v3882_v47 = vld [vmem:[#allocation14_spill] sm:$0xff] }
 0x469   :  { %v972_v60 = vmul.f32 %v939_v48, %v3878_v36  ;;  %v527_v48 = vsub.f32 %v2862_v58, %v505_v15 }
 0x46a   :  { %1498 = vadd.xlane.f32.xlu1 %v1497_v4  ;;  %v913_v18 = vpop.permute.xlu1 %912  ;;  %v3879_v4 = vld [vmem:[#allocation67_spill] sm:$0xff]  ;;  %v439_v36 = vadd.f32 1e-05, %v423_v29 }
 0x46b   :  { %v3254_v32 = vmul.f32 0.015625, %v3879_v4 }
 0x46c   :  { %v1035_v30 = vpop.permute.xlu0 %1034  ;;  %2084 = vrsqrt.f32 %v439_v36 }
 0x46d   :  { %v1076_v41 = vadd.f32 %v1035_v30, %v964_v50  ;;  %v513_v50 = vmul.f32 %v481_v51, %v3172_v11  ;;  %v415_v13 = vmul.f32 %v3254_v32, %v3254_v32  ;;  %v1515_v11 = vsel %vm257_vm0, %v3123_v17, 0.0 }
 0x46e   :  { %1504 = vadd.xlane.f32.xlu1 %v1503_v9  ;;  %v929_v23 = vpop.permute.xlu1 %928  ;;  %v544_v9 = vadd.f32 %v528_v52, %v490_v2  ;;  %v2081_v44 = vpop.eup %2080  ;;  %v1601_v17 = vsel %vm257_vm0, %v3131_v16, 0.0 }
 0x46f   :  { %v1092_v12 = vsel %vm257_vm0, %v548_v63, %v1076_v41  ;;  %v3881_v63 = vld [vmem:[#allocation13_spill] sm:$0xff]  ;;  %v535_v53 = vsub.f32 %v2862_v58, %v513_v50  ;;  %v393_v50 = vmul.f32 0.015625, %v2869_v43 }
 0x470   :  { %1108 = vst [vmem:[#allocation7 + $0x60] sm:$0xff] %v1092_v12  ;;  %v1051_v28 = vpop.permute.xlu0 %1050  ;;  %v489_v41 = vmul.f32 %v473_v7, %v3881_v63  ;;  %v959_v33 = vmul.f32 %v913_v18, %v3881_v63  ;;  %v967_v18 = vmul.f32 %v929_v23, %v3882_v47  ;;  %v1607_v23 = vsel %vm257_vm0, %v3145_v22, 0.0 }
 0x471   :  { %v1084_v55 = vadd.f32 %v1051_v28, %v972_v60  ;;  %v431_v60 = vsub.f32 %v399_v0, %v415_v13  ;;  %v497_v28 = vmul.f32 %v481_v51, %v3882_v47  ;;  %v3283_v51 = vmul.f32 0.015625, %v2802_v38 }
 0x472   :  { %1510 = vadd.xlane.f32.xlu1 %v1509_v62  ;;  %v915_v37 = vpop.permute.xlu1 %914  ;;  %v543_v15 = vadd.f32 %v527_v48, %v489_v41  ;;  %v475_v48 = vmul.f32 %v2081_v44, %v2847_v54  ;;  %v1613_v22 = vsel %vm257_vm0, %v3160_v20, 0.0  ;;  %v3298_v0 = vmul.f32 0.015625, %v2808_v40  ;;  %v3883_v41 = vld [vmem:[#allocation20_spill] sm:$0xff] }
 0x473   :  { %v1100_v30 = vsel %vm257_vm0, %v556_v5, %v1084_v55  ;;  %v960_v24 = vmul.f32 %v915_v37, %v3880_v39  ;;  %v551_v52 = vadd.f32 %v535_v53, %v497_v28  ;;  %v2083_v5 = vpop.eup %2082  ;;  %v447_v55 = vadd.f32 1e-05, %v431_v60  ;;  %v3289_v37 = vld [vmem:[%s3740_s2] ss:$0 sm:$0xff] }
 0x474   :  { %1116 = vst [vmem:[#allocation7 + $0xe0] sm:$0xff] %v1100_v30  ;;  %v507_v2 = vmul.f32 %v475_v48, %v3196_v35  ;;  %v483_v54 = vmul.f32 %v3289_v37, %v2083_v5  ;;  %v409_v38 = vmul.f32 %v3283_v51, %v3283_v51  ;;  %v401_v63 = vmul.f32 0.015625, %v2875_v19 }
 0x475   :  { %v1072_v31 = vadd.f32 %v3133_v56, %v960_v24  ;;  %2086 = vrsqrt.f32 %v447_v55  ;;  %v1619_v20 = vsel %vm257_vm0, %v3169_v14, 0.0  ;;  %v417_v40 = vmul.f32 %v3298_v0, %v3298_v0 }
 0x476   :  { %1516 = vadd.xlane.f32.xlu1 %v1515_v11  ;;  %v1025_v8 = vpop.permute.xlu1 %1024  ;;  %v529_v35 = vsub.f32 %v2862_v58, %v507_v2  ;;  %v515_v30 = vmul.f32 %v483_v54, %v3210_v26  ;;  %v425_v24 = vsub.f32 %v393_v50, %v409_v38  ;;  %v3312_v58 = vld [vmem:[%s3741_s3] ss:$0 sm:$0xff]  ;;  %v1625_v60 = vsel %vm257_vm0, %v3181_v10, 0.0 }
 0x477   :  { %v1088_v7 = vsel %vm257_vm0, %v544_v9, %v1072_v31  ;;  %v1071_v12 = vadd.f32 %v1025_v8, %v959_v33  ;;  %v491_v9 = vmul.f32 %v475_v48, %v3883_v41  ;;  %v433_v8 = vsub.f32 %v401_v63, %v417_v40 }
 0x478   :  { %1104 = vst [vmem:[#allocation7 + $0x20] sm:$0xff] %v1088_v7  ;;  %v537_v19 = vsub.f32 %v3312_v58, %v515_v30  ;;  %v441_v11 = vadd.f32 1e-05, %v425_v24  ;;  %v1637_v5 = vsel %vm257_vm0, %v3214_v27, 0.0  ;;  %v3886_v27 = vld [vmem:[#allocation27_spill] sm:$0xff] }
 0x479   :  { %v1087_v56 = vsel %vm257_vm0, %v543_v15, %v1071_v12  ;;  %v545_v33 = vadd.f32 %v529_v35, %v491_v9  ;;  %v2085_v26 = vpop.eup %2084  ;;  %v3884_v15 = vld [vmem:[#allocation21_spill] sm:$0xff] }
 0x47a   :  { %1103 = vst [vmem:[#allocation7 + $0x10] sm:$0xff] %v1087_v56  ;;  %1602 = vadd.xlane.f32.xlu1 %v1601_v17  ;;  %v1041_v4 = vpop.permute.xlu1 %1040  ;;  %v499_v14 = vmul.f32 %v483_v54, %v3884_v15  ;;  %v477_v47 = vmul.f32 %v3289_v37, %v2085_v26  ;;  %2088 = vrsqrt.f32 %v441_v11  ;;  %v1631_v17 = vsel %vm257_vm0, %v3191_v42, 0.0 }
 0x47b   :  { %v1079_v62 = vadd.f32 %v1041_v4, %v967_v18  ;;  %v449_v18 = vadd.f32 1e-05, %v433_v8  ;;  %v1643_v42 = vsel %vm257_vm0, %v3227_v34, 0.0 }
 0x47c   :  { %v553_v12 = vadd.f32 %v537_v19, %v499_v14  ;;  %v509_v10 = vmul.f32 %v477_v47, %v3238_v57 }
 0x47d   :  { %v1095_v39 = vsel %vm257_vm0, %v551_v52, %v1079_v62  ;;  %2090 = vrsqrt.f32 %v449_v18 }
 0x47e   :  { %1111 = vst [vmem:[#allocation7 + $0x90] sm:$0xff] %v1095_v39  ;;  %1608 = vadd.xlane.f32.xlu1 %v1607_v23  ;;  %v917_v16 = vpop.permute.xlu1 %916  ;;  %v531_v62 = vsub.f32 %v3312_v58, %v509_v10  ;;  %v3885_v39 = vld [vmem:[#allocation26_spill] sm:$0xff] }
 0x47f   :  { %v961_v43 = vmul.f32 %v917_v16, %v3883_v41  ;;  %v493_v16 = vmul.f32 %v477_v47, %v3885_v39 }
 0x481   :  { %v547_v2 = vadd.f32 %v531_v62, %v493_v16 }
 0x482   :  { %1614 = vadd.xlane.f32.xlu1 %v1613_v22  ;;  %v933_v29 = vpop.permute.xlu1 %932  ;;  %v2087_v28 = vpop.eup %2086 }
 0x483   :  { %v969_v53 = vmul.f32 %v933_v29, %v3884_v15  ;;  %v485_v4 = vmul.f32 %v3289_v37, %v2087_v28 }
 0x485   :  { %v517_v48 = vmul.f32 %v485_v4, %v3254_v32  ;;  %v501_v29 = vmul.f32 %v485_v4, %v3886_v27 }
 0x486   :  { %1620 = vadd.xlane.f32.xlu1 %v1619_v20  ;;  %v1029_v13 = vpop.permute.xlu1 %1028 }
 0x487   :  { %v1073_v31 = vadd.f32 %v1029_v13, %v961_v43  ;;  %v539_v50 = vsub.f32 %v3312_v58, %v517_v48  ;;  %v2089_v32 = vpop.eup %2088 }
 0x488   :  { %v479_v63 = vmul.f32 %v3289_v37, %v2089_v32 }
 0x489   :  { %v1089_v36 = vsel %vm257_vm0, %v545_v33, %v1073_v31  ;;  %v555_v30 = vadd.f32 %v539_v50, %v501_v29  ;;  %v3887_v31 = vld [vmem:[#allocation43_spill] sm:$0xff] }
 0x48a   :  { %1105 = vst [vmem:[#allocation7 + $0x30] sm:$0xff] %v1089_v36  ;;  %1626 = vadd.xlane.f32.xlu1 %v1625_v60  ;;  %v1045_v7 = vpop.permute.xlu1 %1044  ;;  %v2091_v41 = vpop.eup %2090  ;;  %v511_v20 = vmul.f32 %v479_v63, %v3283_v51  ;;  %v495_v26 = vmul.f32 %v479_v63, %v3887_v31  ;;  %v3888_v36 = vld [vmem:[#allocation45_spill] sm:$0xff] }
 0x48b   :  { %v1081_v44 = vadd.f32 %v1045_v7, %v969_v53  ;;  %v487_v9 = vmul.f32 %v3289_v37, %v2091_v41 }
 0x48c   :  { %v533_v40 = vsub.f32 %v3312_v58, %v511_v20 }
 0x48d   :  { %v1097_v56 = vsel %vm257_vm0, %v553_v12, %v1081_v44  ;;  %v519_v33 = vmul.f32 %v487_v9, %v3298_v0  ;;  %v503_v7 = vmul.f32 %v487_v9, %v3888_v36 }
 0x48e   :  { %1113 = vst [vmem:[#allocation7 + $0xb0] sm:$0xff] %v1097_v56  ;;  %1632 = vadd.xlane.f32.xlu1 %v1631_v17  ;;  %v921_v52 = vpop.permute.xlu1 %920  ;;  %v549_v15 = vadd.f32 %v533_v40, %v495_v26 }
 0x48f   :  { %v963_v23 = vmul.f32 %v921_v52, %v3885_v39  ;;  %v541_v8 = vsub.f32 %v3312_v58, %v519_v33 }
 0x491   :  { %v557_v44 = vadd.f32 %v541_v8, %v503_v7 }
 0x492   :  { %1638 = vadd.xlane.f32.xlu1 %v1637_v5  ;;  %v937_v55 = vpop.permute.xlu1 %936 }
 0x493   :  { %v971_v22 = vmul.f32 %v937_v55, %v3886_v27 }
 0x496   :  { %1644 = vadd.xlane.f32.xlu1 %v1643_v42  ;;  %v1033_v57 = vpop.permute.xlu1 %1032 }
 0x497   :  { %v1075_v54 = vadd.f32 %v1033_v57, %v963_v23 }
 0x499   :  { %v1091_v38 = vsel %vm257_vm0, %v547_v2, %v1075_v54 }
 0x49a   :  { %1107 = vst [vmem:[#allocation7 + $0x50] sm:$0xff] %v1091_v38  ;;  %v1049_v35 = vpop.permute.xlu1 %1048 }
 0x49b   :  { %v1083_v24 = vadd.f32 %v1049_v35, %v971_v22 }
 0x49d   :  { %v1099_v34 = vsel %vm257_vm0, %v555_v30, %v1083_v24 }
 0x49e   :  { %1115 = vst [vmem:[#allocation7 + $0xd0] sm:$0xff] %v1099_v34 }
 0x4a0   :  { %v925_v43 = vpop.permute.xlu1 %924 }
 0x4a1   :  { %v965_v19 = vmul.f32 %v925_v43, %v3887_v31 }
 0x4a4   :  { %v941_v13 = vpop.permute.xlu1 %940 }
 0x4a5   :  { %v973_v60 = vmul.f32 %v941_v13, %v3888_v36 }
 0x4a6   :  { %v1472_v53 = vpop.xlane.xlu0 %1471 }
 0x4a7   :  { %v3353_v55 = vmul.f32 0.015625, %v1472_v53 }
 0x4a8   :  { %v1037_v11 = vpop.permute.xlu1 %1036 }
 0x4a9   :  { %v1077_v14 = vadd.f32 %v1037_v11, %v965_v19  ;;  %v1662_v48 = vmul.f32 %v3353_v55, %v3353_v55 }
 0x4ab   :  { %v1093_v51 = vsel %vm257_vm0, %v549_v15, %v1077_v14 }
 0x4ac   :  { %1109 = vst [vmem:[#allocation7 + $0x70] sm:$0xff] %v1093_v51  ;;  %v1053_v12 = vpop.permute.xlu1 %1052 }
 0x4ad   :  { %v1085_v0 = vadd.f32 %v1053_v12, %v973_v60 }
 0x4ae   :  { %v1478_v47 = vpop.xlane.xlu0 %1477 }
 0x4af   :  { %v1101_v28 = vsel %vm257_vm0, %v557_v44, %v1085_v0  ;;  %v3371_v9 = vmul.f32 0.015625, %v1478_v47 }
 0x4b0   :  { %1117 = vst [vmem:[#allocation7 + $0xf0] sm:$0xff] %v1101_v28 }
 0x4b1   :  { %v1664_v8 = vmul.f32 %v3371_v9, %v3371_v9 }
 0x4b2   :  { %v3351_v18 = vpop.xlane.xlu0 %1480 }
 0x4b6   :  { %v1484_v56 = vpop.xlane.xlu0 %1483 }
 0x4b7   :  { %v3357_v16 = vmul.f32 0.015625, %v1484_v56 }
 0x4b9   :  { %v1666_v54 = vmul.f32 %v3357_v16, %v3357_v16 }
 0x4ba   :  { %v1490_v17 = vpop.xlane.xlu0 %1489 }
 0x4bb   :  { %v3361_v50 = vmul.f32 0.015625, %v1490_v17 }
 0x4bd   :  { %v1668_v29 = vmul.f32 %v3361_v50, %v3361_v50 }
 0x4be   :  { %v1496_v52 = vpop.xlane.xlu0 %1495 }
 0x4bf   :  { %v3365_v32 = vmul.f32 0.015625, %v1496_v52 }
 0x4c1   :  { %v1670_v41 = vmul.f32 %v3365_v32, %v3365_v32 }
 0x4c2   :  { %v1502_v10 = vpop.xlane.xlu0 %1501 }
 0x4c3   :  { %v3367_v34 = vmul.f32 0.015625, %v1502_v10 }
 0x4c5   :  { %v1672_v33 = vmul.f32 %v3367_v34, %v3367_v34 }
 0x4c6   :  { %v1508_v4 = vpop.xlane.xlu0 %1507 }
 0x4c7   :  { %v3375_v31 = vmul.f32 0.015625, %v1508_v4 }
 0x4c9   :  { %v1674_v51 = vmul.f32 %v3375_v31, %v3375_v31 }
 0x4ca   :  { %v1514_v5 = vpop.xlane.xlu0 %1513 }
 0x4cb   :  { %v3381_v36 = vmul.f32 0.015625, %v1514_v5 }
 0x4cd   :  { %v1676_v56 = vmul.f32 %v3381_v36, %v3381_v36 }
 0x4ce   :  { %v1600_v62 = vpop.xlane.xlu0 %1599 }
 0x4cf   :  { %v1646_v39 = vmul.f32 0.015625, %v1600_v62 }
 0x4d1   :  { %v1678_v23 = vsub.f32 %v1646_v39, %v1662_v48 }
 0x4d2   :  { %v1606_v42 = vpop.xlane.xlu0 %1605 }
 0x4d3   :  { %v1694_v57 = vadd.f32 1e-05, %v1678_v23  ;;  %v1648_v26 = vmul.f32 0.015625, %v1606_v42 }
 0x4d5   :  { %2092 = vrsqrt.f32 %v1694_v57  ;;  %v1680_v7 = vsub.f32 %v1648_v26, %v1664_v8 }
 0x4d6   :  { %v1612_v2 = vpop.xlane.xlu0 %1611 }
 0x4d7   :  { %v1650_v27 = vmul.f32 0.015625, %v1612_v2  ;;  %v1696_v52 = vadd.f32 1e-05, %v1680_v7 }
 0x4d9   :  { %v1682_v22 = vsub.f32 %v1650_v27, %v1666_v54 }
 0x4da   :  { %v1618_v38 = vpop.xlane.xlu0 %1617 }
 0x4db   :  { %v1698_v35 = vadd.f32 1e-05, %v1682_v22  ;;  %v1652_v30 = vmul.f32 0.015625, %v1618_v38 }
 0x4dd   :  { %2094 = vrsqrt.f32 %v1698_v35  ;;  %v1684_v24 = vsub.f32 %v1652_v30, %v1668_v29 }
 0x4de   :  { %v1624_v63 = vpop.xlane.xlu0 %1623 }
 0x4df   :  { %v1700_v43 = vadd.f32 1e-05, %v1684_v24  ;;  %v1654_v20 = vmul.f32 0.015625, %v1624_v63 }
 0x4e1   :  { %2096 = vrsqrt.f32 %v1700_v43  ;;  %v1686_v13 = vsub.f32 %v1654_v20, %v1670_v41 }
 0x4e2   :  { %v2093_v40 = vpop.eup %2092  ;;  %v1630_v19 = vpop.xlane.xlu0 %1629 }
 0x4e3   :  { %v1702_v11 = vadd.f32 1e-05, %v1686_v13  ;;  %v1656_v15 = vmul.f32 0.015625, %v1630_v19  ;;  %v1726_v14 = vmul.f32 %v3289_v37, %v2093_v40 }
 0x4e5   :  { %2098 = vrsqrt.f32 %v1702_v11  ;;  %v1688_v53 = vsub.f32 %v1656_v15, %v1672_v33  ;;  %1758 = vrot.lane.b32.xlu0 %v1726_v14, %s2233_s0  ;;  %v1822_v13 = vmul.f32 %v1726_v14, %v3353_v55  ;;  %v3414_v15 = vmul.f32 0.015625, %v3351_v18 }
 0x4e6   :  { %v1636_v60 = vpop.xlane.xlu0 %1635 }
 0x4e7   :  { %v1704_v12 = vadd.f32 1e-05, %v1688_v53  ;;  %v1658_v44 = vmul.f32 0.015625, %v1636_v60  ;;  %v1475_v0 = vpop.xlane.xlu1 %1474  ;;  %v1838_v26 = vsub.f32 %v3312_v58, %v1822_v13  ;;  %v1665_v7 = vmul.f32 %v3414_v15, %v3414_v15 }
 0x4e8   :  { %v3406_v33 = vmul.f32 0.015625, %v1475_v0 }
 0x4e9   :  { %2100 = vrsqrt.f32 %v1704_v12  ;;  %v1690_v47 = vsub.f32 %v1658_v44, %v1674_v51 }
 0x4ea   :  { %v2095_v28 = vpop.eup %2094  ;;  %v1642_v17 = vpop.xlane.xlu0 %1641  ;;  %v1663_v55 = vmul.f32 %v3406_v33, %v3406_v33 }
 0x4eb   :  { %v1706_v10 = vadd.f32 1e-05, %v1690_v47  ;;  %v1660_v4 = vmul.f32 0.015625, %v1642_v17  ;;  %v1487_v5 = vpop.xlane.xlu1 %1486  ;;  %v1730_v62 = vmul.f32 %v3289_v37, %v2095_v28 }
 0x4ec   :  { %v3423_v12 = vmul.f32 0.015625, %v1487_v5 }
 0x4ed   :  { %2102 = vrsqrt.f32 %v1706_v10  ;;  %v1692_v48 = vsub.f32 %v1660_v4, %v1676_v56  ;;  %1766 = vrot.lane.b32.xlu0 %v1730_v62, %s2233_s0  ;;  %v1826_v51 = vmul.f32 %v1730_v62, %v3357_v16 }
 0x4ee   :  { %v2097_v39 = vpop.eup %2096  ;;  %2104 = vrsqrt.f32 %v1696_v52  ;;  %v1667_v16 = vmul.f32 %v3423_v12, %v3423_v12 }
 0x4ef   :  { %v1708_v23 = vadd.f32 1e-05, %v1692_v48  ;;  %v1493_v42 = vpop.xlane.xlu1 %1492  ;;  %v1732_v57 = vmul.f32 %v3289_v37, %v2097_v39  ;;  %v1842_v28 = vsub.f32 %v3312_v58, %v1826_v51 }
 0x4f0   :  { %v3426_v0 = vmul.f32 0.015625, %v1493_v42 }
 0x4f1   :  { %2106 = vrsqrt.f32 %v1708_v23  ;;  %1770 = vrot.lane.b32.xlu0 %v1732_v57, %s2233_s0  ;;  %v1828_v56 = vmul.f32 %v1732_v57, %v3361_v50 }
 0x4f2   :  { %v2099_v2 = vpop.eup %2098  ;;  %v1669_v4 = vmul.f32 %v3426_v0, %v3426_v0 }
 0x4f3   :  { %v1499_v54 = vpop.xlane.xlu1 %1498  ;;  %v1734_v27 = vmul.f32 %v3289_v37, %v2099_v2  ;;  %v1844_v62 = vsub.f32 %v3312_v58, %v1828_v56 }
 0x4f4   :  { %v3437_v39 = vmul.f32 0.015625, %v1499_v54 }
 0x4f5   :  { %1774 = vrot.lane.b32.xlu0 %v1734_v27, %s2233_s0  ;;  %v1830_v48 = vmul.f32 %v1734_v27, %v3365_v32 }
 0x4f6   :  { %v2101_v22 = vpop.eup %2100 }
 0x4f7   :  { %v1505_v38 = vpop.xlane.xlu1 %1504  ;;  %v1736_v29 = vmul.f32 %v3289_v37, %v2101_v22  ;;  %v1846_v22 = vsub.f32 %v3312_v58, %v1830_v48 }
 0x4f8   :  { %v3440_v57 = vmul.f32 0.015625, %v1505_v38 }
 0x4f9   :  { %1778 = vrot.lane.b32.xlu0 %v1736_v29, %s2233_s0 }
 0x4fa   :  { %v2103_v35 = vpop.eup %2102  ;;  %v1673_v13 = vmul.f32 %v3440_v57, %v3440_v57 }
 0x4fb   :  { %v1511_v30 = vpop.xlane.xlu1 %1510  ;;  %v1738_v24 = vmul.f32 %v3289_v37, %v2103_v35  ;;  %v2105_v63 = vpop.eup %2104  ;;  %v1832_v35 = vmul.f32 %v1736_v29, %v3367_v34 }
 0x4fc   :  { %v3404_v40 = vmul.f32 %v3289_v37, %v2105_v63  ;;  %v1671_v63 = vmul.f32 %v3437_v39, %v3437_v39  ;;  %v3449_v38 = vmul.f32 0.015625, %v1511_v30 }
 0x4fd   :  { %1782 = vrot.lane.b32.xlu0 %v1738_v24, %s2233_s0  ;;  %v1834_v34 = vmul.f32 %v1738_v24, %v3375_v31 }
 0x4fe   :  { %v2107_v41 = vpop.eup %2106  ;;  %v1824_v11 = vmul.f32 %v3404_v40, %v3371_v9  ;;  %v1675_v31 = vmul.f32 %v3449_v38, %v3449_v38 }
 0x4ff   :  { %v3397_v43 = vpop.xlane.xlu1 %1516  ;;  %v3400_v20 = vmul.f32 %v3289_v37, %v2107_v41 }
 0x500   :  { %v1840_v60 = vsub.f32 %v3312_v58, %v1824_v11 }
 0x501   :  { %1786 = vrot.lane.b32.xlu0 %v3400_v20, %s2233_s0 }
 0x503   :  { %v1603_v19 = vpop.xlane.xlu1 %1602 }
 0x504   :  { %v1647_v14 = vmul.f32 0.015625, %v1603_v19 }
 0x505   :  { %1870 = vrot.lane.b32.xlu0 %v1838_v26, %s2233_s0  ;;  %v1848_v26 = vsub.f32 %v3312_v58, %v1832_v35 }
 0x506   :  { %v1679_v8 = vsub.f32 %v1647_v14, %v1663_v55 }
 0x507   :  { %v1609_v53 = vpop.xlane.xlu1 %1608 }
 0x508   :  { %v1695_v9 = vadd.f32 1e-05, %v1679_v8  ;;  %v1649_v18 = vmul.f32 0.015625, %v1609_v53  ;;  %v3457_v8 = vmul.f32 0.015625, %v3397_v43  ;;  %v1850_v53 = vsub.f32 %v3312_v58, %v1834_v34 }
 0x509   :  { %1874 = vrot.lane.b32.xlu0 %v1840_v60, %s2233_s0  ;;  %v1836_v60 = vmul.f32 %v3400_v20, %v3381_v36 }
 0x50a   :  { %2108 = vrsqrt.f32 %v1695_v9  ;;  %v1681_v44 = vsub.f32 %v1649_v18, %v1665_v7  ;;  %v1677_v43 = vmul.f32 %v3457_v8, %v3457_v8 }
 0x50b   :  { %v1615_v47 = vpop.xlane.xlu1 %1614 }
 0x50c   :  { %v1697_v17 = vadd.f32 1e-05, %v1681_v44  ;;  %v1651_v52 = vmul.f32 0.015625, %v1615_v47  ;;  %v1852_v44 = vsub.f32 %v3312_v58, %v1836_v60  ;;  %v3892_v60 = vld [vmem:[#allocation63_spill] sm:$0xff] }
 0x50d   :  { %1878 = vrot.lane.b32.xlu0 %v1842_v28, %s2233_s0 }
 0x50e   :  { %v1683_v10 = vsub.f32 %v1651_v52, %v1667_v16  ;;  %2110 = vrsqrt.f32 %v1697_v17 }
 0x50f   :  { %v1621_v5 = vpop.xlane.xlu1 %1620 }
 0x510   :  { %v1699_v50 = vadd.f32 1e-05, %v1683_v10  ;;  %v1653_v23 = vmul.f32 0.015625, %v1621_v5 }
 0x511   :  { %1882 = vrot.lane.b32.xlu0 %v1844_v62, %s2233_s0 }
 0x512   :  { %v1685_v42 = vsub.f32 %v1653_v23, %v1669_v4  ;;  %2112 = vrsqrt.f32 %v1699_v50 }
 0x513   :  { %v1627_v2 = vpop.xlane.xlu1 %1626 }
 0x514   :  { %v1701_v32 = vadd.f32 1e-05, %v1685_v42  ;;  %v1655_v54 = vmul.f32 0.015625, %v1627_v2 }
 0x515   :  { %1886 = vrot.lane.b32.xlu0 %v1846_v22, %s2233_s0 }
 0x516   :  { %v1687_v27 = vsub.f32 %v1655_v54, %v1671_v63  ;;  %2114 = vrsqrt.f32 %v1701_v32 }
 0x517   :  { %v2109_v41 = vpop.eup %2108  ;;  %v1633_v19 = vpop.xlane.xlu1 %1632 }
 0x518   :  { %v1703_v29 = vadd.f32 1e-05, %v1687_v27  ;;  %v1657_v11 = vmul.f32 0.015625, %v1633_v19  ;;  %v1727_v55 = vmul.f32 %v3289_v37, %v2109_v41  ;;  %v3889_v19 = vld [vmem:[#allocation32_spill] sm:$0xff] }
 0x519   :  { %1890 = vrot.lane.b32.xlu0 %v1848_v26, %s2233_s0  ;;  %v3890_v26 = vld [vmem:[#allocation36_spill] sm:$0xff] }
 0x51a   :  { %v1689_v14 = vsub.f32 %v1657_v11, %v1673_v13  ;;  %1760 = vrot.lane.b32.xlu1 %v1727_v55, %s2233_s0  ;;  %2116 = vrsqrt.f32 %v1703_v29  ;;  %v1823_v2 = vmul.f32 %v1727_v55, %v3406_v33  ;;  %v1246_v34 = vmul.f32 0.015625, %v3890_v26 }
 0x51b   :  { %v1639_v30 = vpop.xlane.xlu1 %1638  ;;  %v2111_v7 = vpop.eup %2110 }
 0x51c   :  { %v1705_v24 = vadd.f32 1e-05, %v1689_v14  ;;  %v1659_v51 = vmul.f32 0.015625, %v1639_v30  ;;  %v1729_v47 = vmul.f32 %v3289_v37, %v2111_v7  ;;  %v1839_v22 = vsub.f32 %v3312_v58, %v1823_v2  ;;  %v3891_v30 = vld [vmem:[#allocation60_spill] sm:$0xff] }
 0x51d   :  { %1894 = vrot.lane.b32.xlu0 %v1850_v53, %s2233_s0 }
 0x51e   :  { %v1691_v9 = vsub.f32 %v1659_v51, %v1675_v31  ;;  %1762 = vrot.lane.b32.xlu1 %v3404_v40, %s2233_s0  ;;  %2118 = vrsqrt.f32 %v1705_v24  ;;  %v1825_v35 = vmul.f32 %v1729_v47, %v3414_v15  ;;  %v1250_v31 = vmul.f32 0.015625, %v3892_v60 }
 0x51f   :  { %v1645_v18 = vpop.xlane.xlu1 %1644  ;;  %v2113_v28 = vpop.eup %2112  ;;  %v3517_v51 = vmul.f32 0.015625, %v2810_v1  ;;  %v3895_v1 = vld [vmem:[#allocation49_spill] sm:$0xff] }
 0x520   :  { %v1707_v36 = vadd.f32 1e-05, %v1691_v9  ;;  %v1661_v20 = vmul.f32 0.015625, %v1645_v18  ;;  %v1731_v40 = vmul.f32 %v3289_v37, %v2113_v28  ;;  %v1841_v63 = vsub.f32 %v3312_v58, %v1825_v35 }
 0x521   :  { %1898 = vrot.lane.b32.xlu0 %v1852_v44, %s2233_s0  ;;  %v1252_v9 = vmul.f32 0.015625, %v2820_v6  ;;  %v1268_v44 = vmul.f32 %v3517_v51, %v3517_v51 }
 0x522   :  { %v1693_v56 = vsub.f32 %v1661_v20, %v1677_v43  ;;  %1764 = vrot.lane.b32.xlu1 %v1729_v47, %s2233_s0  ;;  %2120 = vrsqrt.f32 %v1707_v36  ;;  %v1827_v32 = vmul.f32 %v1731_v40, %v3423_v12  ;;  %v1166_v12 = vmul.f32 0.015625, %v3889_v19  ;;  %v3893_v43 = vld [vmem:[#allocation33_spill] sm:$0xff] }
 0x523   :  { %v2115_v17 = vpop.eup %2114  ;;  %v3522_v18 = vmul.f32 0.015625, %v3893_v43  ;;  %v3894_v20 = vld [vmem:[#allocation37_spill] sm:$0xff] }
 0x524   :  { %v1709_v16 = vadd.f32 1e-05, %v1693_v56  ;;  %v1733_v52 = vmul.f32 %v3289_v37, %v2115_v17  ;;  %v1843_v54 = vsub.f32 %v3312_v58, %v1827_v32  ;;  %v1262_v11 = vmul.f32 %v1166_v12, %v1166_v12  ;;  %v3896_v17 = vld [vmem:[#allocation52_spill] sm:$0xff] }
 0x525   :  { %v1254_v47 = vmul.f32 0.015625, %v3894_v20  ;;  %v1284_v56 = vsub.f32 %v1252_v9, %v1268_v44 }
 0x526   :  { %1768 = vrot.lane.b32.xlu1 %v1731_v40, %s2233_s0  ;;  %2122 = vrsqrt.f32 %v1709_v16  ;;  %v1829_v27 = vmul.f32 %v1733_v52, %v3426_v0  ;;  %v3528_v16 = vmul.f32 0.015625, %v3895_v1  ;;  %v1270_v40 = vmul.f32 %v3522_v18, %v3522_v18 }
 0x527   :  { %v2117_v10 = vpop.eup %2116 }
 0x528   :  { %v1735_v4 = vmul.f32 %v3289_v37, %v2117_v10  ;;  %v1845_v33 = vsub.f32 %v3312_v58, %v1829_v27  ;;  %v1286_v10 = vsub.f32 %v1254_v47, %v1270_v40  ;;  %v3549_v27 = vmul.f32 0.015625, %v2815_v3 }
 0x52a   :  { %1772 = vrot.lane.b32.xlu1 %v1733_v52, %s2233_s0  ;;  %v1831_v41 = vmul.f32 %v1735_v4, %v3437_v39  ;;  %v1278_v39 = vsub.f32 %v1246_v34, %v1262_v11  ;;  %v1256_v52 = vmul.f32 0.015625, %v3896_v17  ;;  %v1302_v2 = vadd.f32 1e-05, %v1286_v10 }
 0x52b   :  { %v2119_v5 = vpop.eup %2118  ;;  %v1260_v34 = vmul.f32 0.015625, %v2824_v46 }
 0x52c   :  { %v1737_v62 = vmul.f32 %v3289_v37, %v2119_v5  ;;  %v1847_v15 = vsub.f32 %v3312_v58, %v1831_v41  ;;  %v1294_v53 = vadd.f32 1e-05, %v1278_v39  ;;  %v1272_v5 = vmul.f32 %v3528_v16, %v3528_v16 }
 0x52e   :  { %1776 = vrot.lane.b32.xlu1 %v1735_v4, %s2233_s0  ;;  %v1833_v13 = vmul.f32 %v1737_v62, %v3440_v57  ;;  %v3509_v57 = vmul.f32 0.015625, %v3891_v30  ;;  %2124 = vrsqrt.f32 %v1294_v53  ;;  %v1300_v4 = vadd.f32 1e-05, %v1284_v56 }
 0x52f   :  { %v2121_v48 = vpop.eup %2120 }
 0x530   :  { %v1739_v50 = vmul.f32 %v3289_v37, %v2121_v48  ;;  %v1849_v0 = vsub.f32 %v3312_v58, %v1833_v13 }
 0x532   :  { %1780 = vrot.lane.b32.xlu1 %v1737_v62, %s2233_s0  ;;  %v1835_v29 = vmul.f32 %v1739_v50, %v3449_v38  ;;  %v1266_v38 = vmul.f32 %v3509_v57, %v3509_v57  ;;  %v3897_v62 = vld [vmem:[#allocation62_spill] sm:$0xff] }
 0x533   :  { %v2123_v23 = vpop.eup %2122  ;;  %v3538_v48 = vmul.f32 0.015625, %v3897_v62 }
 0x534   :  { %v1741_v42 = vmul.f32 %v3289_v37, %v2123_v23  ;;  %v1851_v55 = vsub.f32 %v3312_v58, %v1835_v29  ;;  %v1282_v7 = vsub.f32 %v1250_v31, %v1266_v38  ;;  %v1276_v29 = vmul.f32 %v3549_v27, %v3549_v27 }
 0x536   :  { %1784 = vrot.lane.b32.xlu1 %v1739_v50, %s2233_s0  ;;  %v1837_v14 = vmul.f32 %v1741_v42, %v3457_v8  ;;  %v1298_v28 = vadd.f32 1e-05, %v1282_v7  ;;  %v1288_v50 = vsub.f32 %v1256_v52, %v1272_v5 }
 0x538   :  { %v1853_v24 = vsub.f32 %v3312_v58, %v1837_v14  ;;  %2126 = vrsqrt.f32 %v1298_v28  ;;  %v1292_v14 = vsub.f32 %v1260_v34, %v1276_v29 }
 0x539   :  { %2128 = vrsqrt.f32 %v1300_v4 }
 0x53a   :  { %1788 = vrot.lane.b32.xlu1 %v1741_v42, %s2233_s0  ;;  %2130 = vrsqrt.f32 %v1302_v2  ;;  %v1308_v46 = vadd.f32 1e-05, %v1292_v14 }
 0x53b   :  { %v2125_v42 = vpop.eup %2124 }
 0x53c   :  { %v1326_v19 = vmul.f32 %v3289_v37, %v2125_v42 }
 0x53e   :  { %1872 = vrot.lane.b32.xlu1 %v1839_v22, %s2233_s0  ;;  %v3898_v22 = vld [vmem:[#allocation64_spill] sm:$0xff]  ;;  %v1358_v39 = vmul.f32 %v1326_v19, %v1166_v12  ;;  %v1342_v7 = vmul.f32 %v1326_v19, %v2287_v45 }
 0x53f   :  { %v1258_v35 = vmul.f32 0.015625, %v3898_v22  ;;  %v3901_v19 = vld [vmem:[#allocation40_spill] sm:$0xff] }
 0x540   :  { %v1374_v31 = vsub.f32 %v3312_v58, %v1358_v39 }
 0x542   :  { %1876 = vrot.lane.b32.xlu1 %v1841_v63, %s2233_s0  ;;  %v3899_v63 = vld [vmem:[#allocation47_spill] sm:$0xff]  ;;  %v1390_v43 = vadd.f32 %v1374_v31, %v1342_v7 }
 0x543   :  { %v3544_v32 = vmul.f32 0.015625, %v3899_v63 }
 0x545   :  { %v2127_v30 = vpop.eup %2126 }
 0x546   :  { %1880 = vrot.lane.b32.xlu1 %v1843_v54, %s2233_s0  ;;  %v1274_v54 = vmul.f32 %v3538_v48, %v3538_v48  ;;  %v2129_v38 = vpop.eup %2128 }
 0x547   :  { %v1332_v47 = vmul.f32 %v3289_v37, %v2129_v38  ;;  %v2131_v28 = vpop.eup %2130 }
 0x548   :  { %v1290_v26 = vsub.f32 %v1258_v35, %v1274_v54 }
 0x549   :  { %v1348_v35 = vmul.f32 %v1332_v47, %v2589_v21 }
 0x54a   :  { %1884 = vrot.lane.b32.xlu1 %v1845_v33, %s2233_s0  ;;  %v3900_v33 = vld [vmem:[#allocation51_spill] sm:$0xff] }
 0x54b   :  { %v1248_v41 = vmul.f32 0.015625, %v3900_v33 }
 0x54e   :  { %1888 = vrot.lane.b32.xlu1 %v1847_v15, %s2233_s0  ;;  %v1304_v15 = vadd.f32 1e-05, %v1288_v50 }
 0x550   :  { %2132 = vrsqrt.f32 %v1304_v15 }
 0x552   :  { %1892 = vrot.lane.b32.xlu1 %v1849_v0, %s2233_s0  ;;  %v1264_v0 = vmul.f32 %v3544_v32, %v3544_v32 }
 0x554   :  { %v1280_v11 = vsub.f32 %v1248_v41, %v1264_v0  ;;  %v3902_v0 = vld [vmem:[#allocation48_spill] sm:$0xff] }
 0x556   :  { %1896 = vrot.lane.b32.xlu1 %v1851_v55, %s2233_s0  ;;  %v1306_v55 = vadd.f32 1e-05, %v1290_v26  ;;  %v1296_v53 = vadd.f32 1e-05, %v1280_v11  ;;  %v3589_v26 = vmul.f32 0.015625, %v3901_v19 }
 0x557   :  { %v1759_v8 = vpop.permute.xlu0 %1758 }
 0x558   :  { %2134 = vrsqrt.f32 %v1306_v55  ;;  %v1806_v9 = vmul.f32 %v1759_v8, %v2287_v45  ;;  %v1364_v45 = vmul.f32 %v1332_v47, %v3517_v51  ;;  %v1334_v8 = vmul.f32 %v3289_v37, %v2131_v28 }
 0x559   :  { %2136 = vrsqrt.f32 %v1296_v53 }
 0x55a   :  { %1900 = vrot.lane.b32.xlu1 %v1853_v24, %s2233_s0  ;;  %v1330_v24 = vmul.f32 %v3289_v37, %v2127_v30  ;;  %2138 = vrsqrt.f32 %v1308_v46  ;;  %v1380_v50 = vsub.f32 %v3312_v58, %v1364_v45  ;;  %v1366_v42 = vmul.f32 %v1334_v8, %v3522_v18  ;;  %v3905_v45 = vld [vmem:[#allocation69_spill] sm:$0xff] }
 0x55b   :  { %v1350_v34 = vmul.f32 %v1334_v8, %v2291_v49  ;;  %v3622_v8 = vmul.f32 0.015625, %v3905_v45  ;;  %v3917_v45 = vld [vmem:[#allocation74_spill] sm:$0xff] }
 0x55c   :  { %v1362_v20 = vmul.f32 %v1330_v24, %v3509_v57  ;;  %v1346_v10 = vmul.f32 %v1330_v24, %v2457_v59  ;;  %v1396_v54 = vadd.f32 %v1380_v50, %v1348_v35  ;;  %v1382_v41 = vsub.f32 %v3312_v58, %v1366_v42  ;;  %v3906_v50 = vld [vmem:[#allocation71_spill] sm:$0xff] }
 0x55d   :  { %v2133_v40 = vpop.eup %2132  ;;  %v3907_v42 = vld [vmem:[#allocation19_spill] sm:$0xff] }
 0x55e   :  { %v1378_v17 = vsub.f32 %v3312_v58, %v1362_v20  ;;  %v1336_v4 = vmul.f32 %v3289_v37, %v2133_v40  ;;  %v1398_v55 = vadd.f32 %v1382_v41, %v1350_v34  ;;  %v3910_v34 = vld [vmem:[#allocation75_spill] sm:$0xff] }
 0x55f   :  { %v1767_v36 = vpop.permute.xlu0 %1766 }
 0x560   :  { %v1810_v52 = vmul.f32 %v1767_v36, %v2457_v59  ;;  %v1394_v5 = vadd.f32 %v1378_v17, %v1346_v10  ;;  %v1368_v59 = vmul.f32 %v1336_v4, %v3528_v16  ;;  %v1247_v16 = vmul.f32 0.015625, %v3902_v0 }
 0x561   :  { %v1352_v31 = vmul.f32 %v1336_v4, %v2386_v25  ;;  %v1253_v0 = vmul.f32 0.015625, %v3910_v34 }
 0x562   :  { %v1384_v11 = vsub.f32 %v3312_v58, %v1368_v59  ;;  %v1267_v59 = vmul.f32 %v3622_v8, %v3622_v8 }
 0x563   :  { %v3533_v6 = vpop.permute.xlu0 %1770 }
 0x564   :  { %v1812_v22 = vmul.f32 %v3533_v6, %v2589_v21 }
 0x565   :  { %v2135_v2 = vpop.eup %2134 }
 0x566   :  { %v2137_v63 = vpop.eup %2136  ;;  %v1338_v15 = vmul.f32 %v3289_v37, %v2135_v2 }
 0x567   :  { %v3540_v23 = vpop.permute.xlu0 %1774  ;;  %v2139_v18 = vpop.eup %2138  ;;  %v1328_v39 = vmul.f32 %v3289_v37, %v2137_v63  ;;  %v3909_v63 = vld [vmem:[#allocation73_spill] sm:$0xff] }
 0x568   :  { %v1814_v6 = vmul.f32 %v3540_v23, %v2291_v49  ;;  %v1370_v30 = vmul.f32 %v1338_v15, %v3538_v48  ;;  %v1340_v53 = vmul.f32 %v3289_v37, %v2139_v18  ;;  %v1263_v23 = vmul.f32 %v3589_v26, %v3589_v26  ;;  %v3903_v49 = vld [vmem:[#allocation53_spill] sm:$0xff] }
 0x569   :  { %v3604_v46 = vmul.f32 0.015625, %v3903_v49  ;;  %v1360_v48 = vmul.f32 %v1328_v39, %v3544_v32  ;;  %v1354_v17 = vmul.f32 %v1338_v15, %v2461_v61  ;;  %v1344_v2 = vmul.f32 %v1328_v39, %v3907_v42  ;;  %v3913_v49 = vld [vmem:[#allocation58_spill] sm:$0xff] }
 0x56a   :  { %v1279_v7 = vsub.f32 %v1247_v16, %v1263_v23  ;;  %v1386_v28 = vsub.f32 %v3312_v58, %v1370_v30 }
 0x56b   :  { %v3552_v13 = vpop.permute.xlu0 %1778  ;;  %v1376_v10 = vsub.f32 %v3312_v58, %v1360_v48 }
 0x56c   :  { %v1816_v24 = vmul.f32 %v3552_v13, %v2386_v25  ;;  %v1265_v25 = vmul.f32 %v3604_v46, %v3604_v46  ;;  %v1295_v32 = vadd.f32 1e-05, %v1279_v7 }
 0x56e   :  { %2140 = vrsqrt.f32 %v1295_v32 }
 0x56f   :  { %v3560_v3 = vpop.permute.xlu0 %1782 }
 0x570   :  { %v1818_v13 = vmul.f32 %v3560_v3, %v2461_v61  ;;  %v1251_v3 = vmul.f32 0.015625, %v3906_v50 }
 0x573   :  { %v3562_v60 = vpop.permute.xlu0 %1786 }
 0x577   :  { %v1871_v12 = vpop.permute.xlu0 %1870 }
 0x578   :  { %v1918_v44 = vadd.f32 %v1871_v12, %v1806_v9  ;;  %v1400_v9 = vadd.f32 %v1384_v11, %v1352_v31  ;;  %v3904_v12 = vld [vmem:[#allocation59_spill] sm:$0xff] }
 0x57a   :  { %v1934_v56 = vsel %vm257_vm0, %v1390_v43, %v1918_v44  ;;  %v1249_v44 = vmul.f32 0.015625, %v3904_v12 }
 0x57b   :  { %1951 = vst [vmem:[#allocation7 + $0x8] sm:$0xff] %v1934_v56  ;;  %v3571_v1 = vpop.permute.xlu0 %1874  ;;  %v1372_v56 = vmul.f32 %v1340_v53, %v3549_v27  ;;  %v1402_v27 = vadd.f32 %v1386_v28, %v1354_v17 }
 0x57f   :  { %v1879_v57 = vpop.permute.xlu0 %1878 }
 0x580   :  { %v1922_v62 = vadd.f32 %v1879_v57, %v1810_v52  ;;  %v1281_v57 = vsub.f32 %v1249_v44, %v1265_v25  ;;  %v3915_v44 = vld [vmem:[#allocation70_spill] sm:$0xff]  ;;  %v2141_v25 = vpop.eup %2140 }
 0x582   :  { %v1938_v51 = vsel %vm257_vm0, %v1394_v5, %v1922_v62  ;;  %v1388_v62 = vsub.f32 %v3312_v58, %v1372_v56  ;;  %v1297_v18 = vadd.f32 1e-05, %v1281_v57  ;;  %v1327_v57 = vmul.f32 %v3289_v37, %v2141_v25 }
 0x583   :  { %1955 = vst [vmem:[#allocation7 + $0x48] sm:$0xff] %v1938_v51  ;;  %v1883_v36 = vpop.permute.xlu0 %1882 }
 0x584   :  { %v1924_v33 = vadd.f32 %v1883_v36, %v1812_v22  ;;  %v3908_v22 = vld [vmem:[#allocation44_spill] sm:$0xff]  ;;  %2142 = vrsqrt.f32 %v1297_v18  ;;  %v3919_v18 = vld [vmem:[#allocation15_spill] sm:$0xff] }
 0x585   :  { %v1820_v51 = vmul.f32 %v3562_v60, %v3908_v22  ;;  %v1356_v36 = vmul.f32 %v1340_v53, %v3908_v22 }
 0x586   :  { %v1940_v21 = vsel %vm257_vm0, %v1396_v54, %v1924_v33  ;;  %v3636_v54 = vmul.f32 0.015625, %v3909_v63  ;;  %v1392_v33 = vadd.f32 %v1376_v10, %v1344_v2  ;;  %v1359_v2 = vmul.f32 %v1327_v57, %v3589_v26 }
 0x587   :  { %1957 = vst [vmem:[#allocation7 + $0x68] sm:$0xff] %v1940_v21  ;;  %v1887_v29 = vpop.permute.xlu0 %1886  ;;  %v1404_v19 = vadd.f32 %v1388_v62, %v1356_v36  ;;  %v1283_v21 = vsub.f32 %v1251_v3, %v1267_v59  ;;  %v3918_v62 = vld [vmem:[#allocation76_spill] sm:$0xff] }
 0x588   :  { %v1926_v14 = vadd.f32 %v1887_v29, %v1814_v6  ;;  %v3911_v29 = vld [vmem:[#allocation41_spill] sm:$0xff]  ;;  %v1261_v50 = vmul.f32 0.015625, %v3918_v62  ;;  %v1375_v59 = vsub.f32 %v3312_v58, %v1359_v2 }
 0x589   :  { %v3644_v11 = vmul.f32 0.015625, %v3911_v29  ;;  %v1299_v53 = vadd.f32 1e-05, %v1283_v21 }
 0x58a   :  { %v1942_v38 = vsel %vm257_vm0, %v1398_v55, %v1926_v14  ;;  %v3912_v55 = vld [vmem:[#allocation50_spill] sm:$0xff] }
 0x58b   :  { %1959 = vst [vmem:[#allocation7 + $0x88] sm:$0xff] %v1942_v38  ;;  %v1891_v43 = vpop.permute.xlu0 %1890  ;;  %v1255_v14 = vmul.f32 0.015625, %v3912_v55  ;;  %v1271_v31 = vmul.f32 %v3644_v11, %v3644_v11  ;;  %2144 = vrsqrt.f32 %v1299_v53 }
 0x58c   :  { %v1928_v20 = vadd.f32 %v1891_v43, %v1816_v24  ;;  %v3611_v47 = vpop.permute.xlu1 %1760  ;;  %v3655_v24 = vmul.f32 0.015625, %v3913_v49 }
 0x58d   :  { %v1287_v38 = vsub.f32 %v1255_v14, %v1271_v31 }
 0x58e   :  { %v1944_v40 = vsel %vm257_vm0, %v1400_v9, %v1928_v20  ;;  %v3914_v9 = vld [vmem:[#allocation61_spill] sm:$0xff]  ;;  %v1273_v12 = vmul.f32 %v3655_v24, %v3655_v24  ;;  %v3663_v20 = vmul.f32 0.015625, %v3915_v44 }
 0x58f   :  { %1961 = vst [vmem:[#allocation7 + $0xa8] sm:$0xff] %v1944_v40  ;;  %v1895_v52 = vpop.permute.xlu0 %1894  ;;  %v1257_v43 = vmul.f32 0.015625, %v3914_v9  ;;  %v1303_v28 = vadd.f32 1e-05, %v1287_v38  ;;  %v3916_v40 = vld [vmem:[#allocation72_spill] sm:$0xff] }
 0x590   :  { %v1930_v4 = vadd.f32 %v1895_v52, %v1818_v13  ;;  %v1763_v5 = vpop.permute.xlu1 %1762  ;;  %v1259_v17 = vmul.f32 0.015625, %v3916_v40  ;;  %v1275_v32 = vmul.f32 %v3663_v20, %v3663_v20  ;;  %v3671_v52 = vmul.f32 0.015625, %v3917_v45  ;;  %v3921_v9 = vld [vmem:[#allocation28_spill] sm:$0xff] }
 0x591   :  { %v1808_v61 = vmul.f32 %v1763_v5, %v3907_v42  ;;  %v1289_v13 = vsub.f32 %v1257_v43, %v1273_v12 }
 0x592   :  { %v1946_v35 = vsel %vm257_vm0, %v1402_v27, %v1930_v4  ;;  %v2143_v27 = vpop.eup %2142  ;;  %v1291_v5 = vsub.f32 %v1259_v17, %v1275_v32  ;;  %v1277_v3 = vmul.f32 %v3671_v52, %v3671_v52  ;;  %v3922_v32 = vld [vmem:[#allocation66_spill] sm:$0xff] }
 0x593   :  { %1963 = vst [vmem:[#allocation7 + $0xc8] sm:$0xff] %v1946_v35  ;;  %v1920_v41 = vadd.f32 %v3571_v1, %v1808_v61  ;;  %v1899_v15 = vpop.permute.xlu0 %1898  ;;  %v1269_v1 = vmul.f32 %v3636_v54, %v3636_v54  ;;  %v1305_v4 = vadd.f32 1e-05, %v1289_v13  ;;  %v1329_v61 = vmul.f32 %v3289_v37, %v2143_v27 }
 0x594   :  { %v1932_v6 = vadd.f32 %v1899_v15, %v1820_v51  ;;  %v3639_v60 = vpop.permute.xlu1 %1764  ;;  %v1307_v22 = vadd.f32 1e-05, %v1291_v5  ;;  %v1293_v51 = vsub.f32 %v1261_v50, %v1277_v3  ;;  %v1343_v37 = vmul.f32 %v1327_v57, %v3919_v18  ;;  %v3923_v3 = vld [vmem:[#allocation16_spill] sm:$0xff] }
 0x595   :  { %v1936_v16 = vsel %vm257_vm0, %v1392_v33, %v1920_v41  ;;  %v1285_v23 = vsub.f32 %v1253_v0, %v1269_v1  ;;  %v1361_v63 = vmul.f32 %v1329_v61, %v3604_v46  ;;  %v2158_v41 = vld [vmem:[%s3740_s2] ss:$0 sm:$0xff] }
 0x596   :  { %1953 = vst [vmem:[#allocation7 + $0x28] sm:$0xff] %v1936_v16  ;;  %v1948_v39 = vsel %vm257_vm0, %v1404_v19, %v1932_v6  ;;  %v1309_v33 = vadd.f32 1e-05, %v1293_v51  ;;  %v1807_v19 = vmul.f32 %v3611_v47, %v3919_v18  ;;  %v1391_v6 = vadd.f32 %v1375_v59, %v1343_v37 }
 0x597   :  { %1965 = vst [vmem:[#allocation7 + $0xe8] sm:$0xff] %v1948_v39  ;;  %v1301_v48 = vadd.f32 1e-05, %v1285_v23  ;;  %v1377_v34 = vsub.f32 %v3312_v58, %v1361_v63  ;;  %v3920_v39 = vld [vmem:[#allocation22_spill] sm:$0xff]  ;;  %v2159_v58 = vld [vmem:[%s3741_s3] ss:$0 sm:$0xff] }
 0x598   :  { %v3650_v30 = vpop.permute.xlu1 %1768  ;;  %v2145_v35 = vpop.eup %2144  ;;  %v1809_v1 = vmul.f32 %v3639_v60, %v3920_v39  ;;  %v1345_v14 = vmul.f32 %v1329_v61, %v3920_v39  ;;  %v3926_v39 = vld [vmem:[#allocation68_spill] sm:$0xff]  ;;  %s2234_s3 = smov [#allocation7]  }
 0x599   :  { %2146 = vrsqrt.f32 %v1301_v48  ;;  %v1331_v15 = vmul.f32 %v2158_v41, %v2145_v35  ;;  %v1811_v60 = vmul.f32 %v3650_v30, %v3921_v9  ;;  %s1972_s13 = sshll.u32 %s2234_s3, 4  ;;  %s1973_s13 = int_to_ptr.vmem [resolvable:$true] %s1972_s13 }
 0x59a   :  { %2148 = vrsqrt.f32 %v1303_v28  ;;  %v1393_v23 = vadd.f32 %v1377_v34, %v1345_v14  ;;  %v3925_v34 = vld [vmem:[#allocation30_spill] sm:$0xff]  ;;  %s2200_s14 = scalar_lea.vmem %s1973_s13, 4096  ;;  %p2205_p11 = scmp.lt.s32.totalorder %s1973_s13, %s1973_s13 }
 0x59b   :  { %2150 = vrsqrt.f32 %v1305_v4  ;;  %v1363_v16 = vmul.f32 %v1331_v15, %v3622_v8  ;;  %v1347_v48 = vmul.f32 %v1331_v15, %v3921_v9  ;;  %v3924_v15 = vld [vmem:[#allocation24_spill] sm:$0xff]  ;;  %p2201_p10 = scmp.ne.s32.totalorder %s1973_s13, %s2200_s14  ;;  %p2206_p12 = scmp.lt.s32.totalorder %s2200_s14, %s2200_s14 }
 0x59c   :  { %v3657_v7 = vpop.permute.xlu1 %1772  ;;  %2152 = vrsqrt.f32 %v1307_v22 }
 0x59d   :  { %2154 = vrsqrt.f32 %v1309_v33  ;;  %v1379_v49 = vsub.f32 %v2159_v58, %v1363_v16  ;;  %p2207_p13 = por %p2206_p12, %p2205_p11 }
 0x59f   :  { %v1395_v28 = vadd.f32 %v1379_v49, %v1347_v48  ;;  %p2208_p0 = pnand %p2207_p13, %p2201_p10 }
 0x5a0   :  { %v3665_v56 = vpop.permute.xlu1 %1776 }
 0x5a1   :  { %v1815_v61 = vmul.f32 %v3665_v56, %v3923_v3 }
 0x5a4   :  { %v3673_v10 = vpop.permute.xlu1 %1780 }
 0x5a6   :  { %v2147_v26 = vpop.eup %2146 }
 0x5a7   :  { %v2149_v0 = vpop.eup %2148  ;;  %v1333_v29 = vmul.f32 %v2158_v41, %v2147_v26 }
 0x5a8   :  { %v3679_v42 = vpop.permute.xlu1 %1784  ;;  %v1335_v47 = vmul.f32 %v2158_v41, %v2149_v0  ;;  %v2151_v38 = vpop.eup %2150 }
 0x5a9   :  { %v1365_v8 = vmul.f32 %v1333_v29, %v3636_v54  ;;  %v1337_v40 = vmul.f32 %v2158_v41, %v2151_v38  ;;  %v2153_v17 = vpop.eup %2152  ;;  %v1813_v54 = vmul.f32 %v3657_v7, %v3922_v32  ;;  %v1349_v30 = vmul.f32 %v1333_v29, %v3922_v32 }
 0x5aa   :  { %v1367_v44 = vmul.f32 %v1335_v47, %v3644_v11  ;;  %v1339_v11 = vmul.f32 %v2158_v41, %v2153_v17  ;;  %v2155_v50 = vpop.eup %2154  ;;  %v1351_v2 = vmul.f32 %v1335_v47, %v3923_v3  ;;  %v1819_v0 = vmul.f32 %v3679_v42, %v3925_v34 }
 0x5ab   :  { %v1381_v13 = vsub.f32 %v2159_v58, %v1365_v8  ;;  %v1369_v62 = vmul.f32 %v1337_v40, %v3655_v24  ;;  %v1341_v33 = vmul.f32 %v2158_v41, %v2155_v50  ;;  %v1817_v24 = vmul.f32 %v3673_v10, %v3924_v15 }
 0x5ac   :  { %v3683_v36 = vpop.permute.xlu1 %1788  ;;  %v1383_v27 = vsub.f32 %v2159_v58, %v1367_v44  ;;  %v1371_v63 = vmul.f32 %v1339_v11, %v3663_v20  ;;  %v1353_v18 = vmul.f32 %v1337_v40, %v3924_v15  ;;  %v1355_v41 = vmul.f32 %v1339_v11, %v3925_v34 }
 0x5ad   :  { %v1397_v4 = vadd.f32 %v1381_v13, %v1349_v30  ;;  %v1385_v59 = vsub.f32 %v2159_v58, %v1369_v62  ;;  %v1357_v14 = vmul.f32 %v1341_v33, %v3926_v39 }
 0x5ae   :  { %v1399_v22 = vadd.f32 %v1383_v27, %v1351_v2 }
 0x5af   :  { %v1401_v56 = vadd.f32 %v1385_v59, %v1353_v18 }
 0x5b0   :  { %v1873_v21 = vpop.permute.xlu1 %1872 }
 0x5b1   :  { %v1919_v46 = vadd.f32 %v1873_v21, %v1807_v19  ;;  %v1373_v21 = vmul.f32 %v1341_v33, %v3671_v52 }
 0x5b3   :  { %v1935_v55 = vsel %vm257_vm0, %v1391_v6, %v1919_v46  ;;  %v1387_v6 = vsub.f32 %v2159_v58, %v1371_v63  ;;  %v1389_v29 = vsub.f32 %v2159_v58, %v1373_v21 }
 0x5b4   :  { %1952 = vst [vmem:[#allocation7 + $0x18] sm:$0xff] %v1935_v55  ;;  %v1877_v53 = vpop.permute.xlu1 %1876 }
 0x5b5   :  { %v1921_v31 = vadd.f32 %v1877_v53, %v1809_v1  ;;  %v1403_v46 = vadd.f32 %v1387_v6, %v1355_v41  ;;  %v1821_v1 = vmul.f32 %v3683_v36, %v3926_v39  ;;  %v1405_v42 = vadd.f32 %v1389_v29, %v1357_v14 }
 0x5b7   :  { %v1937_v43 = vsel %vm257_vm0, %v1393_v23, %v1921_v31 }
 0x5b8   :  { %1954 = vst [vmem:[#allocation7 + $0x38] sm:$0xff] %v1937_v43  ;;  %v1881_v12 = vpop.permute.xlu1 %1880 }
 0x5b9   :  { %v1923_v25 = vadd.f32 %v1881_v12, %v1811_v60 }
 0x5bb   :  { %v1939_v45 = vsel %vm257_vm0, %v1395_v28, %v1923_v25 }
 0x5bc   :  { %1956 = vst [vmem:[#allocation7 + $0x58] sm:$0xff] %v1939_v45  ;;  %v1885_v57 = vpop.permute.xlu1 %1884 }
 0x5bd   :  { %v1925_v5 = vadd.f32 %v1885_v57, %v1813_v54 }
 0x5bf   :  { %v1941_v7 = vsel %vm257_vm0, %v1397_v4, %v1925_v5 }
 0x5c0   :  { %1958 = vst [vmem:[#allocation7 + $0x78] sm:$0xff] %v1941_v7  ;;  %v1889_v51 = vpop.permute.xlu1 %1888 }
 0x5c1   :  { %v1927_v35 = vadd.f32 %v1889_v51, %v1815_v61 }
 0x5c3   :  { %v1943_v26 = vsel %vm257_vm0, %v1399_v22, %v1927_v35 }
 0x5c4   :  { %1960 = vst [vmem:[#allocation7 + $0x98] sm:$0xff] %v1943_v26  ;;  %v1893_v37 = vpop.permute.xlu1 %1892 }
 0x5c5   :  { %v1929_v19 = vadd.f32 %v1893_v37, %v1817_v24 }
 0x5c7   :  { %v1945_v20 = vsel %vm257_vm0, %v1401_v56, %v1929_v19 }
 0x5c8   :  { %1962 = vst [vmem:[#allocation7 + $0xb8] sm:$0xff] %v1945_v20  ;;  %v1897_v10 = vpop.permute.xlu1 %1896 }
 0x5c9   :  { %v1931_v16 = vadd.f32 %v1897_v10, %v1819_v0 }
 0x5cb   :  { %v1947_v55 = vsel %vm257_vm0, %v1403_v46, %v1931_v16 }
 0x5cc   :  { %1964 = vst [vmem:[#allocation7 + $0xd8] sm:$0xff] %v1947_v55  ;;  %v1901_v52 = vpop.permute.xlu1 %1900 }
 0x5cd   :  { %v1933_v53 = vadd.f32 %v1901_v52, %v1821_v1 }
 0x5cf   :  { %v1949_v47 = vsel %vm257_vm0, %v1405_v42, %v1933_v53 }
 0x5d0   :  { %1966 = vst [vmem:[#allocation7 + $0xf8] sm:$0xff] %v1949_v47 }
 0x5d1   :  { %2211 = shalt.err (!%p2208_p0)
}
 0x5d2   :  { %1978 = dma.vmem_to_hbm [thread:$0]  %s1973_s13, 4096, %s3742_s4, [#allocation4], %s2227_s18, %s2227_s18, %s2228_s19  }
 0x5d3   :  { %2224 = dma.done.wait [#allocation4], 4096  }
 0x5d4   :  { %2225 = vsyncadd [#allocation4], 4294963200 }
 0x5d5   :  { %1982 = vsyncpa [#allocation3], 1 }
 0x5d6   :  { %1983 = vsyncpa [#allocation6], 1 }
 0x5d7   :  { %1984 = vsyncpa [#allocation4], 1 }

</bundles_post_ra>
